<compile_context>
chip_gen: v7x
topology: tpu7x:2x2x1
jax: 0.10.0
libtpu: 0.0.40
codegen_flags: <defaults>
</compile_context>

<pallas_src>
import functools

import jax
import jax.numpy as jnp
from jax.experimental import pallas as pl
from jax.experimental.pallas import tpu as pltpu

LANE = 128        # vreg lane width; feature dims padded to this
MAX_TILE_B = 256  # cap on batch rows per grid step


def _round_up(n, m):
    return ((n + m - 1) // m) * m


# ----------------------------------------------------------------------------- kernel
def mlp_actor_kernel(x_ref,
                     w1_ref, b1_ref,
                     w2_ref, b2_ref,
                     w3_ref, b3_ref,
                     w4_ref, b4_ref,
                     w5_ref, b5_ref,
                     o_ref):
    """Fused Linear->ReLU (x4) -> Linear -> Sigmoid over one (tile_b, Din) batch tile."""

    def dense(h, w_ref, b_ref):
        # bf16 MXU operands, f32 accumulation; bias-add in f32 (v5e-friendly).
        return jnp.dot(h.astype(jnp.bfloat16), w_ref[...],
                       preferred_element_type=jnp.float32) + b_ref[...]

    x = x_ref[...]                                        # (tile_b, Din) f32
    h = jnp.maximum(dense(x, w1_ref, b1_ref), 0.0)
    h = jnp.maximum(dense(h, w2_ref, b2_ref), 0.0)
    h = jnp.maximum(dense(h, w3_ref, b3_ref), 0.0)
    h = jnp.maximum(dense(h, w4_ref, b4_ref), 0.0)
    y = dense(h, w5_ref, b5_ref)

    # Sigmoid = 1 / (1 + exp(-y)); exp and approx reciprocal both map to the EUP slot.
    o_ref[...] = pl.reciprocal(1.0 + jnp.exp(-y), approx=True).astype(o_ref.dtype)


# ---------------------------------------------------------------------------- wrapper
def prepare_params(params):
    """Zero-pad feature dims to LANE multiples; weights -> bf16, biases -> f32 (1, pad)."""
    prepared = []
    for li, (w, b) in enumerate(params):
        din, dout = w.shape
        din_p = din if li == 0 else _round_up(din, LANE)   # raw input_dim stays as-is
        dout_p = _round_up(dout, LANE)
        w_p = (jnp.zeros((din_p, dout_p), jnp.float32)
               .at[:din, :dout].set(w).astype(jnp.bfloat16))
        b_p = jnp.zeros((1, dout_p), jnp.float32).at[0, :dout].set(b)
        prepared.append((w_p, b_p))
    return prepared


@functools.partial(jax.jit, static_argnames=("out_dim",))
def mlp_actor_forward(x, prepared_params, out_dim):
    """x: (B, input_dim) f32.  prepared_params: output of prepare_params()."""
    B, din = x.shape
    dout_p = prepared_params[-1][0].shape[1]

    # Adaptive batch tile: largest multiple of 128 rows that doesn't over-pad a small
    # batch, capped at MAX_TILE_B (bigger tiles amortize per-grid-step overhead).
    tile_b = min(MAX_TILE_B, _round_up(B, LANE))
    b_pad = _round_up(B, tile_b)
    if b_pad != B:
        x = jnp.pad(x, ((0, b_pad - B), (0, 0)))
    grid = (b_pad // tile_b,)

    flat = [p for wb in prepared_params for p in wb]

    # Weights / biases: constant block index -> DMA'd once, VMEM-resident across steps.
    def const_spec(a):
        return pl.BlockSpec(a.shape, lambda i: (0, 0))

    in_specs = ([pl.BlockSpec((tile_b, din), lambda i: (i, 0))]
                + [const_spec(p) for p in flat])
    out_specs = pl.BlockSpec((tile_b, dout_p), lambda i: (i, 0))   # lane-dense output

    out_padded = pl.pallas_call(
        mlp_actor_kernel,
        out_shape=jax.ShapeDtypeStruct((b_pad, dout_p), jnp.float32),
        grid=grid,
        in_specs=in_specs,
        out_specs=out_specs,
        compiler_params=pltpu.CompilerParams(
            dimension_semantics=("parallel",)),   # shards batch tiles across v7x TCs
    )(x, *flat)

    return out_padded[:B, :out_dim]


# ----------------------------------------------------------------------- init / refs
def init_linear_params(key, in_features, out_features):
    """Mimic torch.nn.Linear default init (uniform +-1/sqrt(fan_in))."""
    kw, kb = jax.random.split(key)
    bound = 1.0 / (in_features ** 0.5)
    w = jax.random.uniform(kw, (in_features, out_features), jnp.float32, -bound, bound)
    b = jax.random.uniform(kb, (out_features,), jnp.float32, -bound, bound)
    return w, b


def make_mlp_actor_params(key, input_dim, output_dim, hidden_size=64):
    dims = [(input_dim, hidden_size),
            (hidden_size, hidden_size),
            (hidden_size, hidden_size),
            (hidden_size, hidden_size),
            (hidden_size, output_dim)]
    keys = jax.random.split(key, len(dims))
    return [init_linear_params(k, din, dout) for k, (din, dout) in zip(keys, dims)]


def reference_forward_f32(x, params):
    h = x
    for i, (w, b) in enumerate(params):
        h = h @ w + b
        h = jnp.maximum(h, 0.0) if i < len(params) - 1 else jax.nn.sigmoid(h)
    return h


def reference_forward_bf16(x, params):
    """Emulates the kernel's numerics: bf16 matmul operands, f32 accumulate, f32 elementwise."""
    h = x
    for i, (w, b) in enumerate(params):
        h = jnp.dot(h.astype(jnp.bfloat16), w.astype(jnp.bfloat16),
                    preferred_element_type=jnp.float32) + b
        h = jnp.maximum(h, 0.0) if i < len(params) - 1 else jax.nn.sigmoid(h)
    return h


# -------------------------------------------------------------------------------- main
if __name__ == "__main__":
    batch = 512          # 2 grid steps at tile_b=256 (exercises pipelining / parallel axis)
    input_dim = 16
    output_dim = 8
    hidden_size = 64

    key = jax.random.PRNGKey(0)
    k_x, k_p = jax.random.split(key)

    x = jax.random.normal(k_x, (batch, input_dim), jnp.float32)
    params = make_mlp_actor_params(k_p, input_dim, output_dim, hidden_size)
    prepared = prepare_params(params)

    out = mlp_actor_forward(x, prepared, output_dim)
    out = jax.block_until_ready(out)
    assert out.shape == (batch, output_dim)

    # Same-numerics reference (bf16 matmuls, f32 accumulate); slack only for the
    # approx-reciprocal sigmoid.
    ref_bf16 = reference_forward_bf16(x, params)
    assert jnp.allclose(out, ref_bf16, atol=2e-3, rtol=2e-3), "mismatch vs bf16-path reference"

    # Full-f32 module semantics; looser tolerance accounts for bf16 weight precision.
    ref_f32 = reference_forward_f32(x, params)
    assert jnp.allclose(out, ref_f32, atol=2e-2, rtol=2e-2), "mismatch vs f32 module reference"

    print("KERNEL_OK")
</pallas_src>

<mosaic_0001>
module attributes {stable_mosaic.version = 11 : i64} {
  func.func @mlp_actor_kernel(%arg0: i32, %arg1: memref<256x16xf32, #tpu.memory_space<vmem>>, %arg2: memref<16x128xbf16, #tpu.memory_space<vmem>>, %arg3: memref<1x128xf32, #tpu.memory_space<vmem>>, %arg4: memref<128x128xbf16, #tpu.memory_space<vmem>>, %arg5: memref<1x128xf32, #tpu.memory_space<vmem>>, %arg6: memref<128x128xbf16, #tpu.memory_space<vmem>>, %arg7: memref<1x128xf32, #tpu.memory_space<vmem>>, %arg8: memref<128x128xbf16, #tpu.memory_space<vmem>>, %arg9: memref<1x128xf32, #tpu.memory_space<vmem>>, %arg10: memref<128x128xbf16, #tpu.memory_space<vmem>>, %arg11: memref<1x128xf32, #tpu.memory_space<vmem>>, %arg12: memref<256x128xf32, #tpu.memory_space<vmem>>) attributes {dimension_semantics = [#tpu.dimension_semantics<parallel>], iteration_bounds = array<i64: 2>, scalar_prefetch = 0 : i64, scratch_operands = 0 : i64, tpu.core_type = #tpu.core_type<tc>, window_params = [{transform_indices = @transform_0, window_bounds = array<i64: 256, 16>}, {pipeline_mode = #tpu.pipeline_mode<synchronous>, transform_indices = @transform_1, window_bounds = array<i64: 16, 128>}, {pipeline_mode = #tpu.pipeline_mode<synchronous>, transform_indices = @transform_2, window_bounds = array<i64: 1, 128>}, {pipeline_mode = #tpu.pipeline_mode<synchronous>, transform_indices = @transform_3, window_bounds = array<i64: 128, 128>}, {pipeline_mode = #tpu.pipeline_mode<synchronous>, transform_indices = @transform_4, window_bounds = array<i64: 1, 128>}, {pipeline_mode = #tpu.pipeline_mode<synchronous>, transform_indices = @transform_5, window_bounds = array<i64: 128, 128>}, {pipeline_mode = #tpu.pipeline_mode<synchronous>, transform_indices = @transform_6, window_bounds = array<i64: 1, 128>}, {pipeline_mode = #tpu.pipeline_mode<synchronous>, transform_indices = @transform_7, window_bounds = array<i64: 128, 128>}, {pipeline_mode = #tpu.pipeline_mode<synchronous>, transform_indices = @transform_8, window_bounds = array<i64: 1, 128>}, {pipeline_mode = #tpu.pipeline_mode<synchronous>, transform_indices = @transform_9, window_bounds = array<i64: 128, 128>}, {pipeline_mode = #tpu.pipeline_mode<synchronous>, transform_indices = @transform_10, window_bounds = array<i64: 1, 128>}, {transform_indices = @transform_11, window_bounds = array<i64: 256, 128>}]} {
    %c0 = arith.constant 0 : index
    %c0_0 = arith.constant 0 : index
    %0 = vector.load %arg1[%c0, %c0_0] : memref<256x16xf32, #tpu.memory_space<vmem>>, vector<256x16xf32>
    %1 = arith.truncf %0 : vector<256x16xf32> to vector<256x16xbf16>
    %c0_1 = arith.constant 0 : index
    %c0_2 = arith.constant 0 : index
    %2 = vector.load %arg2[%c0_1, %c0_2] : memref<16x128xbf16, #tpu.memory_space<vmem>>, vector<16x128xbf16>
    %cst = arith.constant dense<0.000000e+00> : vector<256x128xf32>
    %3 = tpu.matmul %1, %2, %cst {dimension_numbers = #tpu.dot_dimension_numbers<[1], [0], [0], [1], [0, 0, 1, 1], [], []>} : vector<256x16xbf16>, vector<16x128xbf16>, vector<256x128xf32> -> vector<256x128xf32>
    %c0_3 = arith.constant 0 : index
    %c0_4 = arith.constant 0 : index
    %4 = vector.load %arg3[%c0_3, %c0_4] : memref<1x128xf32, #tpu.memory_space<vmem>>, vector<1x128xf32>
    %5 = vector.broadcast %4 : vector<1x128xf32> to vector<256x128xf32>
    %6 = arith.addf %3, %5 : vector<256x128xf32>
    %cst_5 = arith.constant 0.000000e+00 : f32
    %7 = vector.broadcast %cst_5 : f32 to vector<256x128xf32>
    %8 = arith.maximumf %6, %7 : vector<256x128xf32>
    %9 = arith.truncf %8 : vector<256x128xf32> to vector<256x128xbf16>
    %c0_6 = arith.constant 0 : index
    %c0_7 = arith.constant 0 : index
    %10 = vector.load %arg4[%c0_6, %c0_7] : memref<128x128xbf16, #tpu.memory_space<vmem>>, vector<128x128xbf16>
    %cst_8 = arith.constant dense<0.000000e+00> : vector<256x128xf32>
    %11 = tpu.matmul %9, %10, %cst_8 {dimension_numbers = #tpu.dot_dimension_numbers<[1], [0], [0], [1], [0, 0, 1, 1], [], []>} : vector<256x128xbf16>, vector<128x128xbf16>, vector<256x128xf32> -> vector<256x128xf32>
    %c0_9 = arith.constant 0 : index
    %c0_10 = arith.constant 0 : index
    %12 = vector.load %arg5[%c0_9, %c0_10] : memref<1x128xf32, #tpu.memory_space<vmem>>, vector<1x128xf32>
    %13 = vector.broadcast %12 : vector<1x128xf32> to vector<256x128xf32>
    %14 = arith.addf %11, %13 : vector<256x128xf32>
    %cst_11 = arith.constant 0.000000e+00 : f32
    %15 = vector.broadcast %cst_11 : f32 to vector<256x128xf32>
    %16 = arith.maximumf %14, %15 : vector<256x128xf32>
    %17 = arith.truncf %16 : vector<256x128xf32> to vector<256x128xbf16>
    %c0_12 = arith.constant 0 : index
    %c0_13 = arith.constant 0 : index
    %18 = vector.load %arg6[%c0_12, %c0_13] : memref<128x128xbf16, #tpu.memory_space<vmem>>, vector<128x128xbf16>
    %cst_14 = arith.constant dense<0.000000e+00> : vector<256x128xf32>
    %19 = tpu.matmul %17, %18, %cst_14 {dimension_numbers = #tpu.dot_dimension_numbers<[1], [0], [0], [1], [0, 0, 1, 1], [], []>} : vector<256x128xbf16>, vector<128x128xbf16>, vector<256x128xf32> -> vector<256x128xf32>
    %c0_15 = arith.constant 0 : index
    %c0_16 = arith.constant 0 : index
    %20 = vector.load %arg7[%c0_15, %c0_16] : memref<1x128xf32, #tpu.memory_space<vmem>>, vector<1x128xf32>
    %21 = vector.broadcast %20 : vector<1x128xf32> to vector<256x128xf32>
    %22 = arith.addf %19, %21 : vector<256x128xf32>
    %cst_17 = arith.constant 0.000000e+00 : f32
    %23 = vector.broadcast %cst_17 : f32 to vector<256x128xf32>
    %24 = arith.maximumf %22, %23 : vector<256x128xf32>
    %25 = arith.truncf %24 : vector<256x128xf32> to vector<256x128xbf16>
    %c0_18 = arith.constant 0 : index
    %c0_19 = arith.constant 0 : index
    %26 = vector.load %arg8[%c0_18, %c0_19] : memref<128x128xbf16, #tpu.memory_space<vmem>>, vector<128x128xbf16>
    %cst_20 = arith.constant dense<0.000000e+00> : vector<256x128xf32>
    %27 = tpu.matmul %25, %26, %cst_20 {dimension_numbers = #tpu.dot_dimension_numbers<[1], [0], [0], [1], [0, 0, 1, 1], [], []>} : vector<256x128xbf16>, vector<128x128xbf16>, vector<256x128xf32> -> vector<256x128xf32>
    %c0_21 = arith.constant 0 : index
    %c0_22 = arith.constant 0 : index
    %28 = vector.load %arg9[%c0_21, %c0_22] : memref<1x128xf32, #tpu.memory_space<vmem>>, vector<1x128xf32>
    %29 = vector.broadcast %28 : vector<1x128xf32> to vector<256x128xf32>
    %30 = arith.addf %27, %29 : vector<256x128xf32>
    %cst_23 = arith.constant 0.000000e+00 : f32
    %31 = vector.broadcast %cst_23 : f32 to vector<256x128xf32>
    %32 = arith.maximumf %30, %31 : vector<256x128xf32>
    %33 = arith.truncf %32 : vector<256x128xf32> to vector<256x128xbf16>
    %c0_24 = arith.constant 0 : index
    %c0_25 = arith.constant 0 : index
    %34 = vector.load %arg10[%c0_24, %c0_25] : memref<128x128xbf16, #tpu.memory_space<vmem>>, vector<128x128xbf16>
    %cst_26 = arith.constant dense<0.000000e+00> : vector<256x128xf32>
    %35 = tpu.matmul %33, %34, %cst_26 {dimension_numbers = #tpu.dot_dimension_numbers<[1], [0], [0], [1], [0, 0, 1, 1], [], []>} : vector<256x128xbf16>, vector<128x128xbf16>, vector<256x128xf32> -> vector<256x128xf32>
    %c0_27 = arith.constant 0 : index
    %c0_28 = arith.constant 0 : index
    %36 = vector.load %arg11[%c0_27, %c0_28] : memref<1x128xf32, #tpu.memory_space<vmem>>, vector<1x128xf32>
    %37 = vector.broadcast %36 : vector<1x128xf32> to vector<256x128xf32>
    %38 = arith.addf %35, %37 : vector<256x128xf32>
    %cst_29 = arith.constant 0.000000e+00 : f32
    %39 = vector.broadcast %cst_29 : f32 to vector<256x128xf32>
    %40 = arith.subf %39, %38 : vector<256x128xf32>
    %41 = math.exp %40 : vector<256x128xf32>
    %cst_30 = arith.constant 1.000000e+00 : f32
    %42 = vector.broadcast %cst_30 : f32 to vector<256x128xf32>
    %43 = arith.addf %42, %41 : vector<256x128xf32>
    %44 = tpu.reciprocal %43 {approx = true} : vector<256x128xf32> -> vector<256x128xf32>
    %c0_31 = arith.constant 0 : index
    %c0_32 = arith.constant 0 : index
    %45 = vector.load %arg12[%c0_31, %c0_32] : memref<256x128xf32, #tpu.memory_space<vmem>>, vector<256x128xf32>
    tpu.vector_store %arg12[%c0_31, %c0_32], %44 {strides = array<i32>} : memref<256x128xf32, #tpu.memory_space<vmem>>, vector<256x128xf32>,
    return
  }
  func.func @transform_0(%arg0: i32) -> (i32, i32) {
    %c0_i32 = arith.constant 0 : i32
    %c0_i32_0 = arith.constant 0 : i32
    return %arg0, %c0_i32 : i32, i32
  }
  func.func @transform_1(%arg0: i32) -> (i32, i32) {
    %c0_i32 = arith.constant 0 : i32
    %c0_i32_0 = arith.constant 0 : i32
    %c0_i32_1 = arith.constant 0 : i32
    return %c0_i32, %c0_i32_0 : i32, i32
  }
  func.func @transform_2(%arg0: i32) -> (i32, i32) {
    %c0_i32 = arith.constant 0 : i32
    %c0_i32_0 = arith.constant 0 : i32
    %c0_i32_1 = arith.constant 0 : i32
    return %c0_i32, %c0_i32_0 : i32, i32
  }
  func.func @transform_3(%arg0: i32) -> (i32, i32) {
    %c0_i32 = arith.constant 0 : i32
    %c0_i32_0 = arith.constant 0 : i32
    %c0_i32_1 = arith.constant 0 : i32
    return %c0_i32, %c0_i32_0 : i32, i32
  }
  func.func @transform_4(%arg0: i32) -> (i32, i32) {
    %c0_i32 = arith.constant 0 : i32
    %c0_i32_0 = arith.constant 0 : i32
    %c0_i32_1 = arith.constant 0 : i32
    return %c0_i32, %c0_i32_0 : i32, i32
  }
  func.func @transform_5(%arg0: i32) -> (i32, i32) {
    %c0_i32 = arith.constant 0 : i32
    %c0_i32_0 = arith.constant 0 : i32
    %c0_i32_1 = arith.constant 0 : i32
    return %c0_i32, %c0_i32_0 : i32, i32
  }
  func.func @transform_6(%arg0: i32) -> (i32, i32) {
    %c0_i32 = arith.constant 0 : i32
    %c0_i32_0 = arith.constant 0 : i32
    %c0_i32_1 = arith.constant 0 : i32
    return %c0_i32, %c0_i32_0 : i32, i32
  }
  func.func @transform_7(%arg0: i32) -> (i32, i32) {
    %c0_i32 = arith.constant 0 : i32
    %c0_i32_0 = arith.constant 0 : i32
    %c0_i32_1 = arith.constant 0 : i32
    return %c0_i32, %c0_i32_0 : i32, i32
  }
  func.func @transform_8(%arg0: i32) -> (i32, i32) {
    %c0_i32 = arith.constant 0 : i32
    %c0_i32_0 = arith.constant 0 : i32
    %c0_i32_1 = arith.constant 0 : i32
    return %c0_i32, %c0_i32_0 : i32, i32
  }
  func.func @transform_9(%arg0: i32) -> (i32, i32) {
    %c0_i32 = arith.constant 0 : i32
    %c0_i32_0 = arith.constant 0 : i32
    %c0_i32_1 = arith.constant 0 : i32
    return %c0_i32, %c0_i32_0 : i32, i32
  }
  func.func @transform_10(%arg0: i32) -> (i32, i32) {
    %c0_i32 = arith.constant 0 : i32
    %c0_i32_0 = arith.constant 0 : i32
    %c0_i32_1 = arith.constant 0 : i32
    return %c0_i32, %c0_i32_0 : i32, i32
  }
  func.func @transform_11(%arg0: i32) -> (i32, i32) {
    %c0_i32 = arith.constant 0 : i32
    %c0_i32_0 = arith.constant 0 : i32
    return %arg0, %c0_i32 : i32, i32
  }
}

</mosaic_0001>

<bundles_post_ra>
// kernel: mlp_actor_forward.1
= control target key start
LH: loop header
LB: loop body
LE: loop exit
PB: predicated region body
PF: predicated region fallthrough
CT: control target
= control target key end

     0   :  { %s2675_s17 = smov 0   ;;  %s3073_s0 = inlined_call_operand.vmem [shape: f32[512,16], index: 0, kind: input, shape index: {}]   ;;  %s3074_s1 = inlined_call_operand.vmem [shape: bf16[16,128], index: 1, kind: input, shape index: {}]   ;;  %s3075_s2 = inlined_call_operand.vmem [shape: f32[1,128], index: 2, kind: input, shape index: {}]   ;;  %s3076_s3 = inlined_call_operand.vmem [shape: bf16[128,128], index: 3, kind: input, shape index: {}]   ;;  %s3077_s4 = inlined_call_operand.vmem [shape: f32[1,128], index: 4, kind: input, shape index: {}]   ;;  %s3078_s5 = inlined_call_operand.vmem [shape: bf16[128,128], index: 5, kind: input, shape index: {}]   ;;  %s3079_s6 = inlined_call_operand.vmem [shape: f32[1,128], index: 6, kind: input, shape index: {}]   ;;  %s3080_s7 = inlined_call_operand.vmem [shape: bf16[128,128], index: 7, kind: input, shape index: {}]   ;;  %s3081_s8 = inlined_call_operand.vmem [shape: f32[1,128], index: 8, kind: input, shape index: {}]   ;;  %s3082_s9 = inlined_call_operand.vmem [shape: bf16[128,128], index: 9, kind: input, shape index: {}]   ;;  %s3083_s10 = inlined_call_operand.vmem [shape: f32[1,128], index: 10, kind: input, shape index: {}]   ;;  %s3084_s11 = inlined_call_operand.vmem [shape: f32[512,128], index: 11, kind: output, shape index: {}]  }
   0x1 LB: > { %s2032_s18 = sadd.s32 4294967295, %s2613_s17   ;;  %p2036_p0 = scmp.ge.s32.totalorder %s2613_s17, 1  ;;  %s2613_s17 = sphi %s2675_s17, %s21_s17  }
   0x2   : > { %p338_p1 = scmp.lt.s32.totalorder %s2613_s17, 3 }
   0x4   : > { %p339_p2 = pnand %p2036_p0, %p338_p1 }
   0x5   : > { %v2446_v0 = vld [vmem:[%s3074_s1] sm:$0xff] (!%p339_p2)   ;;  %s2037_s21 = sshll.u32 (!%p339_p2), %s2032_s18, 5  ;;  %vm454_vm0 = vcmask (!%p339_p2), 130048   ;;  %v2448_v23 = vld [vmem:[%s3076_s3 + $0x8] sm:$0xff] (!%p339_p2)   ;;  %v2449_v28 = vld [vmem:[%s3076_s3 + $0x10] sm:$0xff] (!%p339_p2)  }
   0x6   : > { %342 = sbr.rel (%p339_p2) target bundleno = 1213 (0x4bd), region = 64  ;;  %p379_p3 = scmp.lt.s32.totalorder (!%p339_p2), %s2037_s21, 63  ;;  %2210 = vmatprep.subr.bf16.mxu0 (!%p339_p2), %v2446_v0  ;;  %2436 = vmatprep.subr.bf16.mxu1 (!%p339_p2), %v2446_v0  ;;  %v2447_v1 = vld [vmem:[%s3076_s3] sm:$0xff] (!%p339_p2)   ;;  %v2450_v37 = vld [vmem:[%s3076_s3 + $0x18] sm:$0xff] (!%p339_p2)   ;;  %v2452_v49 = vld [vmem:[%s3076_s3 + $0x28] sm:$0xff] (!%p339_p2)  }
   0x7   : > { %2211 = vmatpush3.bf16.msra.mxu0 (!%p339_p2), %v2446_v0  ;;  %2437 = vmatpush3.bf16.msra.mxu1 (!%p339_p2), %v2446_v0  ;;  %v2451_v45 = vld [vmem:[%s3076_s3 + $0x20] sm:$0xff] (!%p339_p2)   ;;  %v2453_v55 = vld [vmem:[%s3076_s3 + $0x30] sm:$0xff] (!%p339_p2)   ;;  %v2454_v56 = vld [vmem:[%s3076_s3 + $0x38] sm:$0xff] (!%p339_p2)  }
   0x8   : > { %2244 = vmatprep.subr.bf16.mxu1 (!%p339_p2), %v2447_v1  ;;  %v2455_v57 = vld [vmem:[%s3078_s5] sm:$0xff] (!%p339_p2)   ;;  %v2456_v58 = vld [vmem:[%s3078_s5 + $0x8] sm:$0xff] (!%p339_p2)   ;;  %v2457_v59 = vld [vmem:[%s3078_s5 + $0x10] sm:$0xff] (!%p339_p2)  }
   0x9   : > { %2292 = vmatprep.subr.bf16.mxu0 (!%p339_p2), %v2455_v57  ;;  %v2458_v60 = vld [vmem:[%s3078_s5 + $0x18] sm:$0xff] (!%p339_p2)   ;;  %v2459_v61 = vld [vmem:[%s3078_s5 + $0x20] sm:$0xff] (!%p339_p2)   ;;  %v2460_v62 = vld [vmem:[%s3078_s5 + $0x28] sm:$0xff] (!%p339_p2)  }
   0xa   : > { %v2789_v63 = vld [vmem:[%s3075_s2] ss:$0 sm:$0xff] (!%p339_p2) }
   0xd   : > { %s3086_s21 = smov (!%p379_p3, %s2037_s21), 63 }
   0xe   : > { %s2038_s24 = sshll.u32 %s3086_s21, 3 }
   0xf   : > { %s2697_s27 = scalar_lea.vmem %s3073_s0, %s2038_s24  ;;  %s3019_s20 = scalar_lea.vmem %s3084_s11, %s2038_s24 }
  0x10   : > { %v391_v2 = vld [vmem:[%s2697_s27] sm:$0xff]  ;;  %v392_v3 = vld [vmem:[%s2697_s27 + $0x8] sm:$0xff]  ;;  %v393_v4 = vld [vmem:[%s2697_s27 + $0x10] sm:$0xff] }
  0x11   : > { %v423_v5 = vpack.c.bf16 %v392_v3, %v391_v2  ;;  %v394_v6 = vld [vmem:[%s2697_s27 + $0x18] sm:$0xff]  ;;  %v395_v7 = vld [vmem:[%s2697_s27 + $0x20] sm:$0xff]  ;;  %v396_v8 = vld [vmem:[%s2697_s27 + $0x28] sm:$0xff] }
  0x12   : > { %v424_v9 = vpack.c.bf16 %v394_v6, %v393_v4  ;;  %v425_v10 = vpack.c.bf16 %v396_v8, %v395_v7  ;;  %v397_v11 = vld [vmem:[%s2697_s27 + $0x30] sm:$0xff]  ;;  %v398_v12 = vld [vmem:[%s2697_s27 + $0x38] sm:$0xff]  ;;  %v399_v13 = vld [vmem:[%s2697_s27 + $0x40] sm:$0xff] }
  0x13   : > { %2212 = vmatprep.mubr.msk.bf16.mxu0 %vm454_vm0, %v423_v5  ;;  %v400_v14 = vld [vmem:[%s2697_s27 + $0x48] sm:$0xff]  ;;  %v407_v15 = vld [vmem:[%s2697_s27 + $0x80] sm:$0xff]  ;;  %v409_v18 = vld [vmem:[%s2697_s27 + $0x90] sm:$0xff]  ;;  %v426_v24 = vpack.c.bf16 %v398_v12, %v397_v11 }
  0x14   : > { %2213 = vmatmul.mubr.msk.bf16.vlgmr.msra.gmra.mrb[0].mxu0 %vm454_vm0, %v424_v9  ;;  %v408_v16 = vld [vmem:[%s2697_s27 + $0x88] sm:$0xff]  ;;  %v410_v19 = vld [vmem:[%s2697_s27 + $0x98] sm:$0xff]  ;;  %v411_v20 = vld [vmem:[%s2697_s27 + $0xa0] sm:$0xff]  ;;  %v427_v26 = vpack.c.bf16 %v400_v14, %v399_v13 }
  0x15   : > { %2216 = vmatprep.mubr.msk.bf16.mxu0 %vm454_vm0, %v425_v10  ;;  %v431_v17 = vpack.c.bf16 %v408_v16, %v407_v15  ;;  %v432_v21 = vpack.c.bf16 %v410_v19, %v409_v18  ;;  %v412_v22 = vld [vmem:[%s2697_s27 + $0xa8] sm:$0xff]  ;;  %v413_v27 = vld [vmem:[%s2697_s27 + $0xb0] sm:$0xff]  ;;  %v414_v29 = vld [vmem:[%s2697_s27 + $0xb8] sm:$0xff]  ;;  %2293 = vmatpush3.bf16.msra.mxu0 %v2455_v57 }
  0x16   : > { %v433_v25 = vpack.c.bf16 %v412_v22, %v411_v20  ;;  %v415_v30 = vld [vmem:[%s2697_s27 + $0xc0] sm:$0xff]  ;;  %v416_v31 = vld [vmem:[%s2697_s27 + $0xc8] sm:$0xff]  ;;  %v401_v32 = vld [vmem:[%s2697_s27 + $0x50] sm:$0xff]  ;;  %v434_v36 = vpack.c.bf16 %v414_v29, %v413_v27  ;;  %2294 = vmatprep.subr.bf16.mxu0 %v2456_v58 }
  0x17   : > { %2228 = vmatprep.mubr.msk.bf16.mxu1 %vm454_vm0, %v431_v17  ;;  %v402_v33 = vld [vmem:[%s2697_s27 + $0x58] sm:$0xff]  ;;  %v403_v34 = vld [vmem:[%s2697_s27 + $0x60] sm:$0xff]  ;;  %v404_v35 = vld [vmem:[%s2697_s27 + $0x68] sm:$0xff]  ;;  %v435_v38 = vpack.c.bf16 %v416_v31, %v415_v30 }
  0x18   : > { %2229 = vmatmul.mubr.msk.bf16.vlgmr.msra.gmra.mrb[0].mxu1 %vm454_vm0, %v432_v21  ;;  %v428_v39 = vpack.c.bf16 %v402_v33, %v401_v32  ;;  %v417_v40 = vld [vmem:[%s2697_s27 + $0xd0] sm:$0xff]  ;;  %v418_v41 = vld [vmem:[%s2697_s27 + $0xd8] sm:$0xff]  ;;  %v429_v42 = vpack.c.bf16 %v404_v35, %v403_v34  ;;  %v419_v43 = vld [vmem:[%s2697_s27 + $0xe0] sm:$0xff] }
  0x19   : > { %2232 = vmatprep.mubr.msk.bf16.mxu1 %vm454_vm0, %v433_v25  ;;  %2245 = vmatpush3.bf16.msra.mxu1 %v2447_v1  ;;  %v420_v44 = vld [vmem:[%s2697_s27 + $0xe8] sm:$0xff]  ;;  %v405_v46 = vld [vmem:[%s2697_s27 + $0x70] sm:$0xff]  ;;  %v406_v47 = vld [vmem:[%s2697_s27 + $0x78] sm:$0xff]  ;;  %v436_v48 = vpack.c.bf16 %v418_v41, %v417_v40 }
  0x1a   : > { %2246 = vmatprep.subr.bf16.mxu1 %v2448_v23  ;;  %v437_v50 = vpack.c.bf16 %v420_v44, %v419_v43  ;;  %v430_v51 = vpack.c.bf16 %v406_v47, %v405_v46  ;;  %v421_v52 = vld [vmem:[%s2697_s27 + $0xf0] sm:$0xff]  ;;  %v422_v53 = vld [vmem:[%s2697_s27 + $0xf8] sm:$0xff]  ;;  %2295 = vmatpush3.bf16.msra.mxu0 %v2456_v58 }
  0x1b   : > { %v438_v54 = vpack.c.bf16 %v422_v53, %v421_v52  ;;  %2296 = vmatprep.subr.bf16.mxu0 %v2457_v59 }
  0x1c   : > { %2217 = vmatmul.mubr.msk.bf16.gmra.mrb[4].mxu0 %vm454_vm0, %v426_v24 }
  0x1d   : > { %2220 = vmatprep.mubr.msk.bf16.mxu0 %vm454_vm0, %v427_v26  ;;  %2247 = vmatpush3.bf16.msra.mxu1 %v2448_v23 }
  0x1e   : > { %2248 = vmatprep.subr.bf16.mxu1 %v2449_v28  ;;  %2297 = vmatpush3.bf16.msra.mxu0 %v2457_v59 }
  0x1f   : > { %2298 = vmatprep.subr.bf16.mxu0 %v2458_v60 }
  0x20   : > { %2233 = vmatmul.mubr.msk.bf16.gmra.mrb[4].mxu1 %vm454_vm0, %v434_v36 }
  0x21   : > { %2236 = vmatprep.mubr.msk.bf16.mxu1 %vm454_vm0, %v435_v38  ;;  %2249 = vmatpush3.bf16.msra.mxu1 %v2449_v28 }
  0x22   : > { %2250 = vmatprep.subr.bf16.mxu1 %v2450_v37  ;;  %2299 = vmatpush3.bf16.msra.mxu0 %v2458_v60 }
  0x23   : > { %2300 = vmatprep.subr.bf16.mxu0 %v2459_v61 }
  0x24   : > { %2221 = vmatmul.mubr.msk.bf16.gmra.mrb[8].mxu0 %vm454_vm0, %v428_v39 }
  0x25   : > { %2224 = vmatprep.mubr.msk.bf16.mxu0 %vm454_vm0, %v429_v42  ;;  %2251 = vmatpush3.bf16.msra.mxu1 %v2450_v37 }
  0x26   : > { %2252 = vmatprep.subr.bf16.mxu1 %v2451_v45  ;;  %2301 = vmatpush3.bf16.msra.mxu0 %v2459_v61 }
  0x27   : > { %2302 = vmatprep.subr.bf16.mxu0 %v2460_v62 }
  0x28   : > { %2237 = vmatmul.mubr.msk.bf16.gmra.mrb[8].mxu1 %vm454_vm0, %v436_v48 }
  0x29   : > { %2240 = vmatprep.mubr.msk.bf16.mxu1 %vm454_vm0, %v437_v50  ;;  %2253 = vmatpush3.bf16.msra.mxu1 %v2451_v45 }
  0x2a   : > { %2254 = vmatprep.subr.bf16.mxu1 %v2452_v49  ;;  %2303 = vmatpush3.bf16.msra.mxu0 %v2460_v62 }
  0x2c   : > { %2225 = vmatmul.mubr.msk.bf16.gmra.mrb[12].mxu0 %vm454_vm0, %v430_v51 }
  0x2d   : > { %2255 = vmatpush3.bf16.msra.mxu1 %v2452_v49 }
  0x2e   : > { %2256 = vmatprep.subr.bf16.mxu1 %v2453_v55 }
  0x30   : > { %2241 = vmatmul.mubr.msk.bf16.gmra.mrb[12].mxu1 %vm454_vm0, %v438_v54 }
  0x31   : > { %2257 = vmatpush3.bf16.msra.mxu1 %v2453_v55 }
  0x32   : > { %2258 = vmatprep.subr.bf16.mxu1 %v2454_v56 }
  0x35   : > { %2259 = vmatpush3.bf16.msra.mxu1 %v2454_v56 }
  0xe7   : > { %v2214_v0 = vpop.f32.mrb[0].mxu0 }
  0xe8   : > { %v546_v1 = vadd.f32 %v2214_v0, %v2789_v63  ;;  %v537_v2 = vpop.f32.mrb[1].mxu0 }
  0xe9   : > { %v538_v3 = vadd.f32 %v2789_v63, %v537_v2  ;;  %v2215_v4 = vpop.f32.mrb[2].mxu0 }
  0xea   : > { %v549_v5 = vadd.f32 %v2215_v4, %v2789_v63  ;;  %v540_v6 = vpop.f32.mrb[3].mxu0  ;;  %v666_v8 = vmax.f32 %v546_v1, 0.0 }
  0xeb   : > { %v541_v7 = vadd.f32 %v2789_v63, %v540_v6  ;;  %v2230_v10 = vpop.f32.mrb[0].mxu1  ;;  %v664_v11 = vmax.f32 %v538_v3, 0.0 }
  0xec   : > { %v667_v9 = vmax.f32 %v549_v5, 0.0  ;;  %v610_v13 = vadd.f32 %v2230_v10, %v2789_v63  ;;  %v601_v14 = vpop.f32.mrb[1].mxu1 }
  0xed   : > { %v665_v12 = vmax.f32 %v541_v7, 0.0  ;;  %v602_v16 = vadd.f32 %v2789_v63, %v601_v14  ;;  %v2231_v17 = vpop.f32.mrb[2].mxu1 }
  0xee   : > { %v697_v15 = vpack.c.bf16 %v667_v9, %v666_v8  ;;  %v682_v20 = vmax.f32 %v610_v13, 0.0  ;;  %v613_v21 = vadd.f32 %v2231_v17, %v2789_v63  ;;  %v604_v22 = vpop.f32.mrb[3].mxu1 }
  0xef   : > { %v696_v18 = vpack.c.bf16 %v665_v12, %v664_v11  ;;  %v2218_v19 = vpop.f32.mrb[4].mxu0  ;;  %v680_v25 = vmax.f32 %v602_v16, 0.0  ;;  %v605_v26 = vadd.f32 %v2789_v63, %v604_v22 }
  0xf0   : > { %v562_v23 = vadd.f32 %v2218_v19, %v2789_v63  ;;  %v553_v24 = vpop.f32.mrb[5].mxu0  ;;  %v683_v29 = vmax.f32 %v613_v21, 0.0 }
  0xf1   : > { %v554_v27 = vadd.f32 %v2789_v63, %v553_v24  ;;  %v2219_v28 = vpop.f32.mrb[6].mxu0  ;;  %2260 = vmatprep.mubr.bf16.mxu1 %v696_v18  ;;  %v681_v32 = vmax.f32 %v605_v26, 0.0 }
  0xf2   : > { %v565_v30 = vadd.f32 %v2219_v28, %v2789_v63  ;;  %v556_v31 = vpop.f32.mrb[7].mxu0  ;;  %2261 = vmatmul.mubr.bf16.vlgmr.msra.gmra.mrb[16].mxu1 %v697_v15  ;;  %v2803_v34 = vpack.c.bf16 %v683_v29, %v682_v20  ;;  %v670_v35 = vmax.f32 %v562_v23, 0.0 }
  0xf3   : > { %v557_v33 = vadd.f32 %v2789_v63, %v556_v31  ;;  %v2805_v37 = vpack.c.bf16 %v681_v32, %v680_v25  ;;  %v2234_v38 = vpop.f32.mrb[4].mxu1  ;;  %v668_v39 = vmax.f32 %v554_v27, 0.0 }
  0xf4   : > { %v671_v36 = vmax.f32 %v565_v30, 0.0  ;;  %v626_v41 = vadd.f32 %v2234_v38, %v2789_v63  ;;  %v617_v42 = vpop.f32.mrb[5].mxu1 }
  0xf5   : > { %v669_v40 = vmax.f32 %v557_v33, 0.0  ;;  %v618_v44 = vadd.f32 %v2789_v63, %v617_v42  ;;  %v2235_v45 = vpop.f32.mrb[6].mxu1 }
  0xf6   : > { %v699_v43 = vpack.c.bf16 %v671_v36, %v670_v35  ;;  %v686_v48 = vmax.f32 %v626_v41, 0.0  ;;  %v629_v49 = vadd.f32 %v2235_v45, %v2789_v63  ;;  %v620_v50 = vpop.f32.mrb[7].mxu1 }
  0xf7   : > { %v698_v46 = vpack.c.bf16 %v669_v40, %v668_v39  ;;  %v2222_v47 = vpop.f32.mrb[8].mxu0  ;;  %v684_v53 = vmax.f32 %v618_v44, 0.0  ;;  %v621_v54 = vadd.f32 %v2789_v63, %v620_v50 }
  0xf8   : > { %v578_v51 = vadd.f32 %v2222_v47, %v2789_v63  ;;  %v569_v52 = vpop.f32.mrb[9].mxu0  ;;  %v687_v57 = vmax.f32 %v629_v49, 0.0 }
  0xf9   : > { %v570_v55 = vadd.f32 %v2789_v63, %v569_v52  ;;  %v2223_v56 = vpop.f32.mrb[10].mxu0  ;;  %2264 = vmatprep.mubr.bf16.mxu1 %v698_v46  ;;  %v685_v60 = vmax.f32 %v621_v54, 0.0  ;;  %v2465_v52 = vld [vmem:[%s3080_s7 + $0x10] sm:$0xff]   ;;  %v2467_v54 = vld [vmem:[%s3080_s7 + $0x20] sm:$0xff]  }
  0xfa   : > { %v581_v58 = vadd.f32 %v2223_v56, %v2789_v63  ;;  %v572_v59 = vpop.f32.mrb[11].mxu0  ;;  %2265 = vmatmul.mubr.bf16.gmra.mrb[20].mxu1 %v699_v43  ;;  %v707_v62 = vpack.c.bf16 %v687_v57, %v686_v48  ;;  %v674_v0 = vmax.f32 %v578_v51, 0.0  ;;  %v2464_v51 = vld [vmem:[%s3080_s7 + $0x8] sm:$0xff]   ;;  %v2469_v56 = vld [vmem:[%s3080_s7 + $0x30] sm:$0xff]   ;;  %v2859_v57 = vld [vmem:[%s3077_s4] ss:$0 sm:$0xff] }
  0xfb   : > { %v573_v61 = vadd.f32 %v2789_v63, %v572_v59  ;;  %v706_v2 = vpack.c.bf16 %v685_v60, %v684_v53  ;;  %v2238_v3 = vpop.f32.mrb[8].mxu1  ;;  %v672_v4 = vmax.f32 %v570_v55, 0.0  ;;  %v2466_v53 = vld [vmem:[%s3080_s7 + $0x18] sm:$0xff]   ;;  %v2468_v55 = vld [vmem:[%s3080_s7 + $0x28] sm:$0xff]  }
  0xfc   : > { %v675_v1 = vmax.f32 %v581_v58, 0.0  ;;  %v642_v6 = vadd.f32 %v2238_v3, %v2789_v63  ;;  %v633_v7 = vpop.f32.mrb[9].mxu1 }
  0xfd   : > { %v673_v5 = vmax.f32 %v573_v61, 0.0  ;;  %v634_v9 = vadd.f32 %v2789_v63, %v633_v7  ;;  %v2239_v10 = vpop.f32.mrb[10].mxu1 }
  0xfe   : > { %v701_v8 = vpack.c.bf16 %v675_v1, %v674_v0  ;;  %v690_v13 = vmax.f32 %v642_v6, 0.0  ;;  %v645_v14 = vadd.f32 %v2239_v10, %v2789_v63  ;;  %v636_v15 = vpop.f32.mrb[11].mxu1 }
  0xff   : > { %v700_v11 = vpack.c.bf16 %v673_v5, %v672_v4  ;;  %v2226_v12 = vpop.f32.mrb[12].mxu0  ;;  %v688_v18 = vmax.f32 %v634_v9, 0.0  ;;  %v637_v19 = vadd.f32 %v2789_v63, %v636_v15 }
 0x100   : > { %v594_v16 = vadd.f32 %v2226_v12, %v2789_v63  ;;  %v585_v17 = vpop.f32.mrb[13].mxu0  ;;  %v691_v22 = vmax.f32 %v645_v14, 0.0 }
 0x101   : > { %v586_v20 = vadd.f32 %v2789_v63, %v585_v17  ;;  %v2227_v21 = vpop.f32.mrb[14].mxu0  ;;  %2268 = vmatprep.mubr.bf16.mxu1 %v700_v11  ;;  %v689_v25 = vmax.f32 %v637_v19, 0.0 }
 0x102   : > { %v597_v23 = vadd.f32 %v2227_v21, %v2789_v63  ;;  %v588_v24 = vpop.f32.mrb[15].mxu0  ;;  %2269 = vmatmul.mubr.bf16.gmra.mrb[24].mxu1 %v701_v8  ;;  %v709_v27 = vpack.c.bf16 %v691_v22, %v690_v13  ;;  %v678_v28 = vmax.f32 %v594_v16, 0.0 }
 0x103   : > { %v589_v26 = vadd.f32 %v2789_v63, %v588_v24  ;;  %v708_v30 = vpack.c.bf16 %v689_v25, %v688_v18  ;;  %v2242_v31 = vpop.f32.mrb[12].mxu1  ;;  %v676_v32 = vmax.f32 %v586_v20, 0.0 }
 0x104   : > { %v679_v29 = vmax.f32 %v597_v23, 0.0  ;;  %v658_v35 = vadd.f32 %v2242_v31, %v2789_v63  ;;  %v649_v36 = vpop.f32.mrb[13].mxu1 }
 0x105   : > { %v677_v33 = vmax.f32 %v589_v26, 0.0  ;;  %v650_v39 = vadd.f32 %v2789_v63, %v649_v36  ;;  %v2243_v40 = vpop.f32.mrb[14].mxu1 }
 0x106   : > { %v703_v38 = vpack.c.bf16 %v679_v29, %v678_v28  ;;  %v694_v42 = vmax.f32 %v658_v35, 0.0  ;;  %v661_v43 = vadd.f32 %v2243_v40, %v2789_v63  ;;  %v652_v44 = vpop.f32.mrb[15].mxu1 }
 0x107   : > { %v702_v41 = vpack.c.bf16 %v677_v33, %v676_v32  ;;  %v692_v45 = vmax.f32 %v650_v39, 0.0  ;;  %v653_v46 = vadd.f32 %v2789_v63, %v652_v44  ;;  %v2461_v63 = vld [vmem:[%s3078_s5 + $0x30] sm:$0xff]  }
 0x108   : > { %v695_v47 = vmax.f32 %v661_v43, 0.0  ;;  %2304 = vmatprep.subr.bf16.mxu0 %v2461_v63 }
 0x109   : > { %2272 = vmatprep.mubr.bf16.mxu1 %v702_v41  ;;  %v693_v48 = vmax.f32 %v653_v46, 0.0  ;;  %2305 = vmatpush3.bf16.msra.mxu0 %v2461_v63 }
 0x10a   : > { %2273 = vmatmul.mubr.bf16.gmra.mrb[28].mxu1 %v703_v38  ;;  %v711_v49 = vpack.c.bf16 %v695_v47, %v694_v42 }
 0x10b   : > { %2276 = vmatprep.mubr.bf16.mxu1 %v2805_v37  ;;  %v710_v50 = vpack.c.bf16 %v693_v48, %v692_v45  ;;  %v2462_v37 = vld [vmem:[%s3078_s5 + $0x38] sm:$0xff]  }
 0x10c   : > { %2306 = vmatprep.subr.bf16.mxu0 %v2462_v37 }
 0x10d   : > { %2307 = vmatpush3.bf16.msra.mxu0 %v2462_v37 }
 0x112   : > { %2277 = vmatmul.mubr.bf16.gmra.mrb[32].mxu1 %v2803_v34  ;;  %v2463_v34 = vld [vmem:[%s3080_s7] sm:$0xff]  }
 0x113   : > { %2280 = vmatprep.mubr.bf16.mxu1 %v706_v2  ;;  %2340 = vmatprep.subr.bf16.mxu1 %v2463_v34 }
 0x114   : > { %2341 = vmatpush3.bf16.msra.mxu1 %v2463_v34 }
 0x115   : > { %2342 = vmatprep.subr.bf16.mxu1 %v2464_v51 }
 0x118   : > { %2343 = vmatpush3.bf16.msra.mxu1 %v2464_v51 }
 0x119   : > { %2344 = vmatprep.subr.bf16.mxu1 %v2465_v52 }
 0x11a   : > { %2281 = vmatmul.mubr.bf16.gmra.mrb[36].mxu1 %v707_v62 }
 0x11b   : > { %2284 = vmatprep.mubr.bf16.mxu1 %v708_v30 }
 0x11c   : > { %2345 = vmatpush3.bf16.msra.mxu1 %v2465_v52 }
 0x11d   : > { %2346 = vmatprep.subr.bf16.mxu1 %v2466_v53 }
 0x120   : > { %2347 = vmatpush3.bf16.msra.mxu1 %v2466_v53 }
 0x121   : > { %2348 = vmatprep.subr.bf16.mxu1 %v2467_v54 }
 0x122   : > { %2285 = vmatmul.mubr.bf16.gmra.mrb[40].mxu1 %v709_v27 }
 0x123   : > { %2288 = vmatprep.mubr.bf16.mxu1 %v710_v50 }
 0x124   : > { %2349 = vmatpush3.bf16.msra.mxu1 %v2467_v54 }
 0x125   : > { %2350 = vmatprep.subr.bf16.mxu1 %v2468_v55 }
 0x128   : > { %2351 = vmatpush3.bf16.msra.mxu1 %v2468_v55 }
 0x129   : > { %2352 = vmatprep.subr.bf16.mxu1 %v2469_v56 }
 0x12a   : > { %2289 = vmatmul.mubr.bf16.gmra.mrb[44].mxu1 %v711_v49 }
 0x12c   : > { %2353 = vmatpush3.bf16.msra.mxu1 %v2469_v56 }
 0x1c5   : > { %v2262_v58 = vpop.f32.mrb[16].mxu1 }
 0x1c6   : > { %v826_v59 = vadd.f32 %v2262_v58, %v2859_v57  ;;  %v817_v60 = vpop.f32.mrb[17].mxu1 }
 0x1c7   : > { %v818_v61 = vadd.f32 %v2859_v57, %v817_v60  ;;  %v2263_v62 = vpop.f32.mrb[18].mxu1 }
 0x1c8   : > { %v829_v0 = vadd.f32 %v2263_v62, %v2859_v57  ;;  %v820_v1 = vpop.f32.mrb[19].mxu1  ;;  %v946_v3 = vmax.f32 %v826_v59, 0.0 }
 0x1c9   : > { %v821_v2 = vadd.f32 %v2859_v57, %v820_v1  ;;  %v944_v5 = vmax.f32 %v818_v61, 0.0 }
 0x1ca   : > { %v947_v4 = vmax.f32 %v829_v0, 0.0 }
 0x1cb   : > { %v945_v6 = vmax.f32 %v821_v2, 0.0 }
 0x1cc   : > { %v977_v7 = vpack.c.bf16 %v947_v4, %v946_v3 }
 0x1cd   : > { %v976_v8 = vpack.c.bf16 %v945_v6, %v944_v5  ;;  %v2266_v9 = vpop.f32.mrb[20].mxu1 }
 0x1ce   : > { %v842_v10 = vadd.f32 %v2266_v9, %v2859_v57  ;;  %v833_v11 = vpop.f32.mrb[21].mxu1 }
 0x1cf   : > { %v834_v12 = vadd.f32 %v2859_v57, %v833_v11  ;;  %v2267_v13 = vpop.f32.mrb[22].mxu1  ;;  %2308 = vmatprep.mubr.bf16.mxu0 %v976_v8 }
 0x1d0   : > { %v845_v14 = vadd.f32 %v2267_v13, %v2859_v57  ;;  %v836_v15 = vpop.f32.mrb[23].mxu1  ;;  %2309 = vmatmul.mubr.bf16.vlgmr.msra.gmra.mrb[16].mxu0 %v977_v7  ;;  %v950_v17 = vmax.f32 %v842_v10, 0.0 }
 0x1d1   : > { %v837_v16 = vadd.f32 %v2859_v57, %v836_v15  ;;  %v948_v19 = vmax.f32 %v834_v12, 0.0 }
 0x1d2   : > { %v951_v18 = vmax.f32 %v845_v14, 0.0 }
 0x1d3   : > { %v949_v20 = vmax.f32 %v837_v16, 0.0 }
 0x1d4   : > { %v979_v21 = vpack.c.bf16 %v951_v18, %v950_v17 }
 0x1d5   : > { %v978_v22 = vpack.c.bf16 %v949_v20, %v948_v19  ;;  %v2270_v23 = vpop.f32.mrb[24].mxu1 }
 0x1d6   : > { %v858_v24 = vadd.f32 %v2270_v23, %v2859_v57  ;;  %v849_v25 = vpop.f32.mrb[25].mxu1 }
 0x1d7   : > { %v850_v26 = vadd.f32 %v2859_v57, %v849_v25  ;;  %v2271_v27 = vpop.f32.mrb[26].mxu1  ;;  %2312 = vmatprep.mubr.bf16.mxu0 %v978_v22 }
 0x1d8   : > { %v861_v28 = vadd.f32 %v2271_v27, %v2859_v57  ;;  %v852_v29 = vpop.f32.mrb[27].mxu1  ;;  %2313 = vmatmul.mubr.bf16.gmra.mrb[20].mxu0 %v979_v21  ;;  %v954_v31 = vmax.f32 %v858_v24, 0.0 }
 0x1d9   : > { %v853_v30 = vadd.f32 %v2859_v57, %v852_v29  ;;  %v952_v33 = vmax.f32 %v850_v26, 0.0 }
 0x1da   : > { %v955_v32 = vmax.f32 %v861_v28, 0.0 }
 0x1db   : > { %v953_v35 = vmax.f32 %v853_v30, 0.0 }
 0x1dc   : > { %v981_v36 = vpack.c.bf16 %v955_v32, %v954_v31 }
 0x1dd   : > { %v980_v38 = vpack.c.bf16 %v953_v35, %v952_v33  ;;  %v2274_v39 = vpop.f32.mrb[28].mxu1 }
 0x1de   : > { %v874_v40 = vadd.f32 %v2274_v39, %v2859_v57  ;;  %v865_v41 = vpop.f32.mrb[29].mxu1 }
 0x1df   : > { %v866_v42 = vadd.f32 %v2859_v57, %v865_v41  ;;  %v2275_v43 = vpop.f32.mrb[30].mxu1  ;;  %2316 = vmatprep.mubr.bf16.mxu0 %v980_v38 }
 0x1e0   : > { %v877_v44 = vadd.f32 %v2275_v43, %v2859_v57  ;;  %v868_v45 = vpop.f32.mrb[31].mxu1  ;;  %2317 = vmatmul.mubr.bf16.gmra.mrb[24].mxu0 %v981_v36  ;;  %v958_v47 = vmax.f32 %v874_v40, 0.0 }
 0x1e1   : > { %v869_v46 = vadd.f32 %v2859_v57, %v868_v45  ;;  %v956_v49 = vmax.f32 %v866_v42, 0.0 }
 0x1e2   : > { %v959_v48 = vmax.f32 %v877_v44, 0.0 }
 0x1e3   : > { %v957_v50 = vmax.f32 %v869_v46, 0.0  ;;  %v2470_v46 = vld [vmem:[%s3080_s7 + $0x38] sm:$0xff]  }
 0x1e4   : > { %v983_v63 = vpack.c.bf16 %v959_v48, %v958_v47  ;;  %2354 = vmatprep.subr.bf16.mxu1 %v2470_v46  ;;  %v2471_v47 = vld [vmem:[%s3082_s9] sm:$0xff]   ;;  %v2473_v48 = vld [vmem:[%s3082_s9 + $0x10] sm:$0xff]  }
 0x1e5   : > { %v982_v37 = vpack.c.bf16 %v957_v50, %v956_v49  ;;  %v2278_v34 = vpop.f32.mrb[32].mxu1  ;;  %2355 = vmatpush3.bf16.msra.mxu1 %v2470_v46  ;;  %2388 = vmatprep.subr.bf16.mxu0 %v2471_v47  ;;  %v2474_v49 = vld [vmem:[%s3082_s9 + $0x18] sm:$0xff]   ;;  %v2475_v50 = vld [vmem:[%s3082_s9 + $0x20] sm:$0xff]  }
 0x1e6   : > { %v890_v51 = vadd.f32 %v2278_v34, %v2859_v57  ;;  %v881_v52 = vpop.f32.mrb[33].mxu1  ;;  %2389 = vmatpush3.bf16.msra.mxu0 %v2471_v47  ;;  %v2920_v34 = vld [vmem:[%s3079_s6] ss:$0 sm:$0xff] }
 0x1e7   : > { %v882_v53 = vadd.f32 %v2859_v57, %v881_v52  ;;  %v2279_v54 = vpop.f32.mrb[34].mxu1  ;;  %2320 = vmatprep.mubr.bf16.mxu0 %v982_v37  ;;  %v2477_v37 = vld [vmem:[%s3082_s9 + $0x30] sm:$0xff]  }
 0x1e8   : > { %v893_v55 = vadd.f32 %v2279_v54, %v2859_v57  ;;  %v884_v56 = vpop.f32.mrb[35].mxu1  ;;  %2321 = vmatmul.mubr.bf16.gmra.mrb[28].mxu0 %v983_v63  ;;  %v962_v59 = vmax.f32 %v890_v51, 0.0  ;;  %v2476_v63 = vld [vmem:[%s3082_s9 + $0x28] sm:$0xff]  }
 0x1e9   : > { %v885_v58 = vadd.f32 %v2859_v57, %v884_v56  ;;  %v960_v61 = vmax.f32 %v882_v53, 0.0 }
 0x1ea   : > { %v963_v60 = vmax.f32 %v893_v55, 0.0 }
 0x1eb   : > { %v961_v62 = vmax.f32 %v885_v58, 0.0 }
 0x1ec   : > { %v985_v0 = vpack.c.bf16 %v963_v60, %v962_v59 }
 0x1ed   : > { %v984_v1 = vpack.c.bf16 %v961_v62, %v960_v61  ;;  %v2282_v2 = vpop.f32.mrb[36].mxu1 }
 0x1ee   : > { %v906_v3 = vadd.f32 %v2282_v2, %v2859_v57  ;;  %v897_v4 = vpop.f32.mrb[37].mxu1 }
 0x1ef   : > { %v898_v5 = vadd.f32 %v2859_v57, %v897_v4  ;;  %v2283_v6 = vpop.f32.mrb[38].mxu1  ;;  %2324 = vmatprep.mubr.bf16.mxu0 %v984_v1 }
 0x1f0   : > { %v909_v7 = vadd.f32 %v2283_v6, %v2859_v57  ;;  %v900_v8 = vpop.f32.mrb[39].mxu1  ;;  %2325 = vmatmul.mubr.bf16.gmra.mrb[32].mxu0 %v985_v0  ;;  %v966_v10 = vmax.f32 %v906_v3, 0.0 }
 0x1f1   : > { %v901_v9 = vadd.f32 %v2859_v57, %v900_v8  ;;  %v964_v12 = vmax.f32 %v898_v5, 0.0 }
 0x1f2   : > { %v967_v11 = vmax.f32 %v909_v7, 0.0 }
 0x1f3   : > { %v965_v13 = vmax.f32 %v901_v9, 0.0 }
 0x1f4   : > { %v987_v14 = vpack.c.bf16 %v967_v11, %v966_v10 }
 0x1f5   : > { %v986_v15 = vpack.c.bf16 %v965_v13, %v964_v12  ;;  %v2286_v16 = vpop.f32.mrb[40].mxu1 }
 0x1f6   : > { %v922_v17 = vadd.f32 %v2286_v16, %v2859_v57  ;;  %v913_v18 = vpop.f32.mrb[41].mxu1 }
 0x1f7   : > { %v914_v19 = vadd.f32 %v2859_v57, %v913_v18  ;;  %v2287_v20 = vpop.f32.mrb[42].mxu1  ;;  %2328 = vmatprep.mubr.bf16.mxu0 %v986_v15 }
 0x1f8   : > { %v925_v21 = vadd.f32 %v2287_v20, %v2859_v57  ;;  %v916_v22 = vpop.f32.mrb[43].mxu1  ;;  %2329 = vmatmul.mubr.bf16.gmra.mrb[36].mxu0 %v987_v14  ;;  %v970_v24 = vmax.f32 %v922_v17, 0.0 }
 0x1f9   : > { %v917_v23 = vadd.f32 %v2859_v57, %v916_v22  ;;  %v968_v26 = vmax.f32 %v914_v19, 0.0 }
 0x1fa   : > { %v971_v25 = vmax.f32 %v925_v21, 0.0 }
 0x1fb   : > { %v969_v27 = vmax.f32 %v917_v23, 0.0 }
 0x1fc   : > { %v989_v28 = vpack.c.bf16 %v971_v25, %v970_v24 }
 0x1fd   : > { %v988_v29 = vpack.c.bf16 %v969_v27, %v968_v26  ;;  %v2290_v30 = vpop.f32.mrb[44].mxu1 }
 0x1fe   : > { %v938_v31 = vadd.f32 %v2290_v30, %v2859_v57  ;;  %v929_v32 = vpop.f32.mrb[45].mxu1 }
 0x1ff   : > { %v930_v33 = vadd.f32 %v2859_v57, %v929_v32  ;;  %v2291_v35 = vpop.f32.mrb[46].mxu1  ;;  %2332 = vmatprep.mubr.bf16.mxu0 %v988_v29 }
 0x200   : > { %v941_v36 = vadd.f32 %v2291_v35, %v2859_v57  ;;  %v932_v38 = vpop.f32.mrb[47].mxu1  ;;  %2333 = vmatmul.mubr.bf16.gmra.mrb[40].mxu0 %v989_v28  ;;  %v974_v40 = vmax.f32 %v938_v31, 0.0 }
 0x201   : > { %v933_v39 = vadd.f32 %v2859_v57, %v932_v38  ;;  %v972_v42 = vmax.f32 %v930_v33, 0.0  ;;  %v2472_v57 = vld [vmem:[%s3082_s9 + $0x8] sm:$0xff]  }
 0x202   : > { %v975_v41 = vmax.f32 %v941_v36, 0.0  ;;  %2390 = vmatprep.subr.bf16.mxu0 %v2472_v57 }
 0x203   : > { %v973_v43 = vmax.f32 %v933_v39, 0.0  ;;  %2391 = vmatpush3.bf16.msra.mxu0 %v2472_v57 }
 0x204   : > { %v991_v44 = vpack.c.bf16 %v975_v41, %v974_v40  ;;  %2392 = vmatprep.subr.bf16.mxu0 %v2473_v48 }
 0x205   : > { %v990_v45 = vpack.c.bf16 %v973_v43, %v972_v42 }
 0x207   : > { %2336 = vmatprep.mubr.bf16.mxu0 %v990_v45  ;;  %2393 = vmatpush3.bf16.msra.mxu0 %v2473_v48 }
 0x208   : > { %2337 = vmatmul.mubr.bf16.gmra.mrb[44].mxu0 %v991_v44  ;;  %2394 = vmatprep.subr.bf16.mxu0 %v2474_v49 }
 0x20b   : > { %2395 = vmatpush3.bf16.msra.mxu0 %v2474_v49 }
 0x20c   : > { %2396 = vmatprep.subr.bf16.mxu0 %v2475_v50 }
 0x20f   : > { %2397 = vmatpush3.bf16.msra.mxu0 %v2475_v50 }
 0x210   : > { %2398 = vmatprep.subr.bf16.mxu0 %v2476_v63 }
 0x213   : > { %2399 = vmatpush3.bf16.msra.mxu0 %v2476_v63 }
 0x214   : > { %2400 = vmatprep.subr.bf16.mxu0 %v2477_v37 }
 0x217   : > { %2401 = vmatpush3.bf16.msra.mxu0 %v2477_v37 }
 0x2a3   : > { %v2310_v51 = vpop.f32.mrb[16].mxu0 }
 0x2a4   : > { %v1106_v52 = vadd.f32 %v2310_v51, %v2920_v34  ;;  %v1097_v53 = vpop.f32.mrb[17].mxu0 }
 0x2a5   : > { %v1098_v54 = vadd.f32 %v2920_v34, %v1097_v53  ;;  %v2311_v55 = vpop.f32.mrb[18].mxu0 }
 0x2a6   : > { %v1109_v56 = vadd.f32 %v2311_v55, %v2920_v34  ;;  %v1100_v58 = vpop.f32.mrb[19].mxu0  ;;  %v1226_v60 = vmax.f32 %v1106_v52, 0.0 }
 0x2a7   : > { %v1101_v59 = vadd.f32 %v2920_v34, %v1100_v58  ;;  %v1224_v62 = vmax.f32 %v1098_v54, 0.0 }
 0x2a8   : > { %v1227_v61 = vmax.f32 %v1109_v56, 0.0 }
 0x2a9   : > { %v1225_v0 = vmax.f32 %v1101_v59, 0.0 }
 0x2aa   : > { %v1257_v1 = vpack.c.bf16 %v1227_v61, %v1226_v60 }
 0x2ab   : > { %v1256_v2 = vpack.c.bf16 %v1225_v0, %v1224_v62  ;;  %v2314_v3 = vpop.f32.mrb[20].mxu0 }
 0x2ac   : > { %v1122_v4 = vadd.f32 %v2314_v3, %v2920_v34  ;;  %v1113_v5 = vpop.f32.mrb[21].mxu0 }
 0x2ad   : > { %v1114_v6 = vadd.f32 %v2920_v34, %v1113_v5  ;;  %v2315_v7 = vpop.f32.mrb[22].mxu0  ;;  %2356 = vmatprep.mubr.bf16.mxu1 %v1256_v2 }
 0x2ae   : > { %v1125_v8 = vadd.f32 %v2315_v7, %v2920_v34  ;;  %v1116_v9 = vpop.f32.mrb[23].mxu0  ;;  %2357 = vmatmul.mubr.bf16.vlgmr.msra.gmra.mrb[48].mxu1 %v1257_v1  ;;  %v1230_v11 = vmax.f32 %v1122_v4, 0.0 }
 0x2af   : > { %v1117_v10 = vadd.f32 %v2920_v34, %v1116_v9  ;;  %v1228_v13 = vmax.f32 %v1114_v6, 0.0 }
 0x2b0   : > { %v1231_v12 = vmax.f32 %v1125_v8, 0.0 }
 0x2b1   : > { %v1229_v14 = vmax.f32 %v1117_v10, 0.0 }
 0x2b2   : > { %v1259_v15 = vpack.c.bf16 %v1231_v12, %v1230_v11 }
 0x2b3   : > { %v1258_v16 = vpack.c.bf16 %v1229_v14, %v1228_v13  ;;  %v2318_v17 = vpop.f32.mrb[24].mxu0 }
 0x2b4   : > { %v1138_v18 = vadd.f32 %v2318_v17, %v2920_v34  ;;  %v1129_v19 = vpop.f32.mrb[25].mxu0 }
 0x2b5   : > { %v1130_v20 = vadd.f32 %v2920_v34, %v1129_v19  ;;  %v2319_v21 = vpop.f32.mrb[26].mxu0  ;;  %2360 = vmatprep.mubr.bf16.mxu1 %v1258_v16 }
 0x2b6   : > { %v1141_v22 = vadd.f32 %v2319_v21, %v2920_v34  ;;  %v1132_v23 = vpop.f32.mrb[27].mxu0  ;;  %2361 = vmatmul.mubr.bf16.gmra.mrb[52].mxu1 %v1259_v15  ;;  %v1234_v25 = vmax.f32 %v1138_v18, 0.0 }
 0x2b7   : > { %v1133_v24 = vadd.f32 %v2920_v34, %v1132_v23  ;;  %v1232_v27 = vmax.f32 %v1130_v20, 0.0 }
 0x2b8   : > { %v1235_v26 = vmax.f32 %v1141_v22, 0.0 }
 0x2b9   : > { %v1233_v28 = vmax.f32 %v1133_v24, 0.0 }
 0x2ba   : > { %v1261_v29 = vpack.c.bf16 %v1235_v26, %v1234_v25 }
 0x2bb   : > { %v1260_v30 = vpack.c.bf16 %v1233_v28, %v1232_v27  ;;  %v2322_v31 = vpop.f32.mrb[28].mxu0 }
 0x2bc   : > { %v1154_v32 = vadd.f32 %v2322_v31, %v2920_v34  ;;  %v1145_v33 = vpop.f32.mrb[29].mxu0 }
 0x2bd   : > { %v1146_v35 = vadd.f32 %v2920_v34, %v1145_v33  ;;  %v2323_v36 = vpop.f32.mrb[30].mxu0  ;;  %2364 = vmatprep.mubr.bf16.mxu1 %v1260_v30 }
 0x2be   : > { %v1157_v38 = vadd.f32 %v2323_v36, %v2920_v34  ;;  %v1148_v39 = vpop.f32.mrb[31].mxu0  ;;  %2365 = vmatmul.mubr.bf16.gmra.mrb[56].mxu1 %v1261_v29  ;;  %v1238_v41 = vmax.f32 %v1154_v32, 0.0 }
 0x2bf   : > { %v1149_v40 = vadd.f32 %v2920_v34, %v1148_v39  ;;  %v1236_v43 = vmax.f32 %v1146_v35, 0.0 }
 0x2c0   : > { %v1239_v42 = vmax.f32 %v1157_v38, 0.0 }
 0x2c1   : > { %v1237_v44 = vmax.f32 %v1149_v40, 0.0  ;;  %v2478_v40 = vld [vmem:[%s3082_s9 + $0x38] sm:$0xff]  }
 0x2c2   : > { %v1263_v45 = vpack.c.bf16 %v1239_v42, %v1238_v41  ;;  %2402 = vmatprep.subr.bf16.mxu0 %v2478_v40  ;;  %v2960_v41 = vld [vmem:[%s3081_s8] ss:$0 sm:$0xff] }
 0x2c3   : > { %v1262_v46 = vpack.c.bf16 %v1237_v44, %v1236_v43  ;;  %v2326_v47 = vpop.f32.mrb[32].mxu0  ;;  %2403 = vmatpush3.bf16.msra.mxu0 %v2478_v40 }
 0x2c4   : > { %v1170_v57 = vadd.f32 %v2326_v47, %v2920_v34  ;;  %v1161_v48 = vpop.f32.mrb[33].mxu0 }
 0x2c5   : > { %v1162_v49 = vadd.f32 %v2920_v34, %v1161_v48  ;;  %v2327_v50 = vpop.f32.mrb[34].mxu0  ;;  %2368 = vmatprep.mubr.bf16.mxu1 %v1262_v46 }
 0x2c6   : > { %v1173_v63 = vadd.f32 %v2327_v50, %v2920_v34  ;;  %v1164_v37 = vpop.f32.mrb[35].mxu0  ;;  %2369 = vmatmul.mubr.bf16.gmra.mrb[60].mxu1 %v1263_v45  ;;  %v1242_v52 = vmax.f32 %v1170_v57, 0.0 }
 0x2c7   : > { %v1165_v51 = vadd.f32 %v2920_v34, %v1164_v37  ;;  %v1240_v54 = vmax.f32 %v1162_v49, 0.0 }
 0x2c8   : > { %v1243_v53 = vmax.f32 %v1173_v63, 0.0 }
 0x2c9   : > { %v1241_v55 = vmax.f32 %v1165_v51, 0.0 }
 0x2ca   : > { %v1265_v56 = vpack.c.bf16 %v1243_v53, %v1242_v52 }
 0x2cb   : > { %v1264_v58 = vpack.c.bf16 %v1241_v55, %v1240_v54  ;;  %v2330_v59 = vpop.f32.mrb[36].mxu0 }
 0x2cc   : > { %v1186_v60 = vadd.f32 %v2330_v59, %v2920_v34  ;;  %v1177_v61 = vpop.f32.mrb[37].mxu0 }
 0x2cd   : > { %v1178_v62 = vadd.f32 %v2920_v34, %v1177_v61  ;;  %v2331_v0 = vpop.f32.mrb[38].mxu0  ;;  %2372 = vmatprep.mubr.bf16.mxu1 %v1264_v58 }
 0x2ce   : > { %v1189_v1 = vadd.f32 %v2331_v0, %v2920_v34  ;;  %v1180_v2 = vpop.f32.mrb[39].mxu0  ;;  %2373 = vmatmul.mubr.bf16.gmra.mrb[64].mxu1 %v1265_v56  ;;  %v1246_v4 = vmax.f32 %v1186_v60, 0.0 }
 0x2cf   : > { %v1181_v3 = vadd.f32 %v2920_v34, %v1180_v2  ;;  %v1244_v6 = vmax.f32 %v1178_v62, 0.0 }
 0x2d0   : > { %v1247_v5 = vmax.f32 %v1189_v1, 0.0 }
 0x2d1   : > { %v1245_v7 = vmax.f32 %v1181_v3, 0.0 }
 0x2d2   : > { %v1267_v8 = vpack.c.bf16 %v1247_v5, %v1246_v4 }
 0x2d3   : > { %v1266_v9 = vpack.c.bf16 %v1245_v7, %v1244_v6  ;;  %v2334_v10 = vpop.f32.mrb[40].mxu0 }
 0x2d4   : > { %v1202_v11 = vadd.f32 %v2334_v10, %v2920_v34  ;;  %v1193_v12 = vpop.f32.mrb[41].mxu0 }
 0x2d5   : > { %v1194_v13 = vadd.f32 %v2920_v34, %v1193_v12  ;;  %v2335_v14 = vpop.f32.mrb[42].mxu0  ;;  %2376 = vmatprep.mubr.bf16.mxu1 %v1266_v9 }
 0x2d6   : > { %v1205_v15 = vadd.f32 %v2335_v14, %v2920_v34  ;;  %v1196_v16 = vpop.f32.mrb[43].mxu0  ;;  %2377 = vmatmul.mubr.bf16.gmra.mrb[68].mxu1 %v1267_v8  ;;  %v1250_v18 = vmax.f32 %v1202_v11, 0.0 }
 0x2d7   : > { %v1197_v17 = vadd.f32 %v2920_v34, %v1196_v16  ;;  %v1248_v20 = vmax.f32 %v1194_v13, 0.0 }
 0x2d8   : > { %v1251_v19 = vmax.f32 %v1205_v15, 0.0 }
 0x2d9   : > { %v1249_v21 = vmax.f32 %v1197_v17, 0.0 }
 0x2da   : > { %v1269_v22 = vpack.c.bf16 %v1251_v19, %v1250_v18 }
 0x2db   : > { %v1268_v23 = vpack.c.bf16 %v1249_v21, %v1248_v20  ;;  %v2338_v24 = vpop.f32.mrb[44].mxu0 }
 0x2dc   : > { %v1218_v25 = vadd.f32 %v2338_v24, %v2920_v34  ;;  %v1209_v26 = vpop.f32.mrb[45].mxu0 }
 0x2dd   : > { %v1210_v27 = vadd.f32 %v2920_v34, %v1209_v26  ;;  %v2339_v28 = vpop.f32.mrb[46].mxu0  ;;  %2380 = vmatprep.mubr.bf16.mxu1 %v1268_v23 }
 0x2de   : > { %v1221_v29 = vadd.f32 %v2339_v28, %v2920_v34  ;;  %v1212_v30 = vpop.f32.mrb[47].mxu0  ;;  %2381 = vmatmul.mubr.bf16.gmra.mrb[72].mxu1 %v1269_v22  ;;  %v1254_v32 = vmax.f32 %v1218_v25, 0.0 }
 0x2df   : > { %v1213_v31 = vadd.f32 %v2920_v34, %v1212_v30  ;;  %v1252_v35 = vmax.f32 %v1210_v27, 0.0 }
 0x2e0   : > { %v1255_v33 = vmax.f32 %v1221_v29, 0.0 }
 0x2e1   : > { %v1253_v36 = vmax.f32 %v1213_v31, 0.0 }
 0x2e2   : > { %v1271_v38 = vpack.c.bf16 %v1255_v33, %v1254_v32 }
 0x2e3   : > { %v1270_v39 = vpack.c.bf16 %v1253_v36, %v1252_v35 }
 0x2e5   : > { %2384 = vmatprep.mubr.bf16.mxu1 %v1270_v39 }
 0x2e6   : > { %2385 = vmatmul.mubr.bf16.gmra.mrb[76].mxu1 %v1271_v38 }
 0x381   : > { %v2358_v34 = vpop.f32.mrb[48].mxu1 }
 0x382   : > { %v1386_v42 = vadd.f32 %v2358_v34, %v2960_v41  ;;  %v1377_v43 = vpop.f32.mrb[49].mxu1 }
 0x383   : > { %v1378_v44 = vadd.f32 %v2960_v41, %v1377_v43  ;;  %v2359_v45 = vpop.f32.mrb[50].mxu1 }
 0x384   : > { %v1389_v46 = vadd.f32 %v2359_v45, %v2960_v41  ;;  %v1380_v47 = vpop.f32.mrb[51].mxu1  ;;  %v1506_v48 = vmax.f32 %v1386_v42, 0.0 }
 0x385   : > { %v1381_v57 = vadd.f32 %v2960_v41, %v1380_v47  ;;  %v1504_v50 = vmax.f32 %v1378_v44, 0.0 }
 0x386   : > { %v1507_v49 = vmax.f32 %v1389_v46, 0.0 }
 0x387   : > { %v1505_v63 = vmax.f32 %v1381_v57, 0.0 }
 0x388   : > { %v1537_v37 = vpack.c.bf16 %v1507_v49, %v1506_v48 }
 0x389   : > { %v1536_v51 = vpack.c.bf16 %v1505_v63, %v1504_v50  ;;  %v2362_v52 = vpop.f32.mrb[52].mxu1 }
 0x38a   : > { %v1402_v53 = vadd.f32 %v2362_v52, %v2960_v41  ;;  %v1393_v54 = vpop.f32.mrb[53].mxu1 }
 0x38b   : > { %v1394_v55 = vadd.f32 %v2960_v41, %v1393_v54  ;;  %v2363_v56 = vpop.f32.mrb[54].mxu1  ;;  %2404 = vmatprep.mubr.bf16.mxu0 %v1536_v51 }
 0x38c   : > { %v1405_v58 = vadd.f32 %v2363_v56, %v2960_v41  ;;  %v1396_v59 = vpop.f32.mrb[55].mxu1  ;;  %2405 = vmatmul.mubr.bf16.vlgmr.msra.gmra.mrb[48].mxu0 %v1537_v37  ;;  %v1510_v61 = vmax.f32 %v1402_v53, 0.0 }
 0x38d   : > { %v1397_v60 = vadd.f32 %v2960_v41, %v1396_v59  ;;  %v1508_v0 = vmax.f32 %v1394_v55, 0.0 }
 0x38e   : > { %v1511_v62 = vmax.f32 %v1405_v58, 0.0 }
 0x38f   : > { %v1509_v1 = vmax.f32 %v1397_v60, 0.0 }
 0x390   : > { %v1539_v2 = vpack.c.bf16 %v1511_v62, %v1510_v61 }
 0x391   : > { %v1538_v3 = vpack.c.bf16 %v1509_v1, %v1508_v0  ;;  %v2366_v4 = vpop.f32.mrb[56].mxu1 }
 0x392   : > { %v1418_v5 = vadd.f32 %v2366_v4, %v2960_v41  ;;  %v1409_v6 = vpop.f32.mrb[57].mxu1 }
 0x393   : > { %v1410_v7 = vadd.f32 %v2960_v41, %v1409_v6  ;;  %v2367_v8 = vpop.f32.mrb[58].mxu1  ;;  %2408 = vmatprep.mubr.bf16.mxu0 %v1538_v3 }
 0x394   : > { %v1421_v9 = vadd.f32 %v2367_v8, %v2960_v41  ;;  %v1412_v10 = vpop.f32.mrb[59].mxu1  ;;  %2409 = vmatmul.mubr.bf16.gmra.mrb[52].mxu0 %v1539_v2  ;;  %v1514_v12 = vmax.f32 %v1418_v5, 0.0 }
 0x395   : > { %v1413_v11 = vadd.f32 %v2960_v41, %v1412_v10  ;;  %v1512_v14 = vmax.f32 %v1410_v7, 0.0 }
 0x396   : > { %v1515_v13 = vmax.f32 %v1421_v9, 0.0 }
 0x397   : > { %v1513_v15 = vmax.f32 %v1413_v11, 0.0 }
 0x398   : > { %v1541_v16 = vpack.c.bf16 %v1515_v13, %v1514_v12 }
 0x399   : > { %v1540_v17 = vpack.c.bf16 %v1513_v15, %v1512_v14  ;;  %v2370_v18 = vpop.f32.mrb[60].mxu1 }
 0x39a   : > { %v1434_v19 = vadd.f32 %v2370_v18, %v2960_v41  ;;  %v1425_v20 = vpop.f32.mrb[61].mxu1 }
 0x39b   : > { %v1426_v21 = vadd.f32 %v2960_v41, %v1425_v20  ;;  %v2371_v22 = vpop.f32.mrb[62].mxu1  ;;  %2412 = vmatprep.mubr.bf16.mxu0 %v1540_v17 }
 0x39c   : > { %v1437_v23 = vadd.f32 %v2371_v22, %v2960_v41  ;;  %v1428_v24 = vpop.f32.mrb[63].mxu1  ;;  %2413 = vmatmul.mubr.bf16.gmra.mrb[56].mxu0 %v1541_v16  ;;  %v1518_v26 = vmax.f32 %v1434_v19, 0.0 }
 0x39d   : > { %v1429_v25 = vadd.f32 %v2960_v41, %v1428_v24  ;;  %v1516_v28 = vmax.f32 %v1426_v21, 0.0 }
 0x39e   : > { %v1519_v27 = vmax.f32 %v1437_v23, 0.0 }
 0x39f   : > { %v1517_v29 = vmax.f32 %v1429_v25, 0.0  ;;  %v2997_v25 = vld [vmem:[%s3083_s10] ss:$0 sm:$0xff] }
 0x3a0   : > { %v1543_v30 = vpack.c.bf16 %v1519_v27, %v1518_v26 }
 0x3a1   : > { %v1542_v31 = vpack.c.bf16 %v1517_v29, %v1516_v28  ;;  %v2374_v32 = vpop.f32.mrb[64].mxu1 }
 0x3a2   : > { %v1450_v33 = vadd.f32 %v2374_v32, %v2960_v41  ;;  %v1441_v35 = vpop.f32.mrb[65].mxu1 }
 0x3a3   : > { %v1442_v36 = vadd.f32 %v2960_v41, %v1441_v35  ;;  %v2375_v38 = vpop.f32.mrb[66].mxu1  ;;  %2416 = vmatprep.mubr.bf16.mxu0 %v1542_v31 }
 0x3a4   : > { %v1453_v39 = vadd.f32 %v2375_v38, %v2960_v41  ;;  %v1444_v40 = vpop.f32.mrb[67].mxu1  ;;  %2417 = vmatmul.mubr.bf16.gmra.mrb[60].mxu0 %v1543_v30  ;;  %v1522_v42 = vmax.f32 %v1450_v33, 0.0 }
 0x3a5   : > { %v1445_v34 = vadd.f32 %v2960_v41, %v1444_v40  ;;  %v1520_v44 = vmax.f32 %v1442_v36, 0.0 }
 0x3a6   : > { %v1523_v43 = vmax.f32 %v1453_v39, 0.0 }
 0x3a7   : > { %v1521_v45 = vmax.f32 %v1445_v34, 0.0 }
 0x3a8   : > { %v1545_v46 = vpack.c.bf16 %v1523_v43, %v1522_v42 }
 0x3a9   : > { %v1544_v47 = vpack.c.bf16 %v1521_v45, %v1520_v44  ;;  %v2378_v57 = vpop.f32.mrb[68].mxu1 }
 0x3aa   : > { %v1466_v48 = vadd.f32 %v2378_v57, %v2960_v41  ;;  %v1457_v49 = vpop.f32.mrb[69].mxu1 }
 0x3ab   : > { %v1458_v50 = vadd.f32 %v2960_v41, %v1457_v49  ;;  %v2379_v63 = vpop.f32.mrb[70].mxu1  ;;  %2420 = vmatprep.mubr.bf16.mxu0 %v1544_v47 }
 0x3ac   : > { %v1469_v37 = vadd.f32 %v2379_v63, %v2960_v41  ;;  %v1460_v51 = vpop.f32.mrb[71].mxu1  ;;  %2421 = vmatmul.mubr.bf16.gmra.mrb[64].mxu0 %v1545_v46  ;;  %v1526_v53 = vmax.f32 %v1466_v48, 0.0 }
 0x3ad   : > { %v1461_v52 = vadd.f32 %v2960_v41, %v1460_v51  ;;  %v1524_v55 = vmax.f32 %v1458_v50, 0.0 }
 0x3ae   : > { %v1527_v54 = vmax.f32 %v1469_v37, 0.0 }
 0x3af   : > { %v1525_v56 = vmax.f32 %v1461_v52, 0.0 }
 0x3b0   : > { %v1547_v58 = vpack.c.bf16 %v1527_v54, %v1526_v53 }
 0x3b1   : > { %v1546_v59 = vpack.c.bf16 %v1525_v56, %v1524_v55  ;;  %v2382_v60 = vpop.f32.mrb[72].mxu1 }
 0x3b2   : > { %v1482_v61 = vadd.f32 %v2382_v60, %v2960_v41  ;;  %v1473_v62 = vpop.f32.mrb[73].mxu1 }
 0x3b3   : > { %v1474_v0 = vadd.f32 %v2960_v41, %v1473_v62  ;;  %v2383_v1 = vpop.f32.mrb[74].mxu1  ;;  %2424 = vmatprep.mubr.bf16.mxu0 %v1546_v59 }
 0x3b4   : > { %v1485_v2 = vadd.f32 %v2383_v1, %v2960_v41  ;;  %v1476_v3 = vpop.f32.mrb[75].mxu1  ;;  %2425 = vmatmul.mubr.bf16.gmra.mrb[68].mxu0 %v1547_v58  ;;  %v1530_v5 = vmax.f32 %v1482_v61, 0.0 }
 0x3b5   : > { %v1477_v4 = vadd.f32 %v2960_v41, %v1476_v3  ;;  %v1528_v7 = vmax.f32 %v1474_v0, 0.0 }
 0x3b6   : > { %v1531_v6 = vmax.f32 %v1485_v2, 0.0 }
 0x3b7   : > { %v1529_v8 = vmax.f32 %v1477_v4, 0.0 }
 0x3b8   : > { %v1549_v9 = vpack.c.bf16 %v1531_v6, %v1530_v5 }
 0x3b9   : > { %v1548_v10 = vpack.c.bf16 %v1529_v8, %v1528_v7  ;;  %v2386_v11 = vpop.f32.mrb[76].mxu1 }
 0x3ba   : > { %v1498_v12 = vadd.f32 %v2386_v11, %v2960_v41  ;;  %v1489_v13 = vpop.f32.mrb[77].mxu1 }
 0x3bb   : > { %v1490_v14 = vadd.f32 %v2960_v41, %v1489_v13  ;;  %v2387_v15 = vpop.f32.mrb[78].mxu1  ;;  %2428 = vmatprep.mubr.bf16.mxu0 %v1548_v10 }
 0x3bc   : > { %v1501_v16 = vadd.f32 %v2387_v15, %v2960_v41  ;;  %v1492_v17 = vpop.f32.mrb[79].mxu1  ;;  %2429 = vmatmul.mubr.bf16.gmra.mrb[72].mxu0 %v1549_v9  ;;  %v1534_v19 = vmax.f32 %v1498_v12, 0.0 }
 0x3bd   : > { %v1493_v18 = vadd.f32 %v2960_v41, %v1492_v17  ;;  %v1532_v21 = vmax.f32 %v1490_v14, 0.0 }
 0x3be   : > { %v1535_v20 = vmax.f32 %v1501_v16, 0.0 }
 0x3bf   : > { %v1533_v22 = vmax.f32 %v1493_v18, 0.0 }
 0x3c0   : > { %v1551_v23 = vpack.c.bf16 %v1535_v20, %v1534_v19 }
 0x3c1   : > { %v1550_v24 = vpack.c.bf16 %v1533_v22, %v1532_v21 }
 0x3c3   : > { %2432 = vmatprep.mubr.bf16.mxu0 %v1550_v24 }
 0x3c4   : > { %2433 = vmatmul.mubr.bf16.gmra.mrb[76].mxu0 %v1551_v23 }
 0x45f   : > { %v2406_v26 = vpop.f32.mrb[48].mxu0 }
 0x460   : > { %v1666_v27 = vadd.f32 %v2406_v26, %v2997_v25  ;;  %v1657_v28 = vpop.f32.mrb[49].mxu0 }
 0x461   : > { %v1658_v29 = vadd.f32 %v2997_v25, %v1657_v28  ;;  %v2407_v41 = vpop.f32.mrb[50].mxu0 }
 0x462   : > { %v1786_v30 = vsub.f32 0.0, %v1666_v27  ;;  %v1669_v31 = vadd.f32 %v2407_v41, %v2997_v25  ;;  %v1660_v32 = vpop.f32.mrb[51].mxu0 }
 0x463   : > { %v1784_v33 = vsub.f32 0.0, %v1658_v29  ;;  %v1661_v35 = vadd.f32 %v2997_v25, %v1660_v32 }
 0x464   : > { %v1820_v36 = vmul.f32 1.442695, %v1786_v30  ;;  %v1787_v38 = vsub.f32 0.0, %v1669_v31 }
 0x465   : > { %v1816_v39 = vmul.f32 1.442695, %v1784_v33  ;;  %v1785_v40 = vsub.f32 0.0, %v1661_v35 }
 0x466   : > { %2479 = vpow2.f32 %v1820_v36  ;;  %v1822_v34 = vmul.f32 1.442695, %v1787_v38 }
 0x467   : > { %2481 = vpow2.f32 %v1816_v39  ;;  %v1818_v42 = vmul.f32 1.442695, %v1785_v40  ;;  %v2410_v43 = vpop.f32.mrb[52].mxu0 }
 0x468   : > { %2483 = vpow2.f32 %v1822_v34  ;;  %v1682_v44 = vadd.f32 %v2410_v43, %v2997_v25  ;;  %v1673_v45 = vpop.f32.mrb[53].mxu0 }
 0x469   : > { %2485 = vpow2.f32 %v1818_v42  ;;  %v1674_v46 = vadd.f32 %v2997_v25, %v1673_v45  ;;  %v2411_v47 = vpop.f32.mrb[54].mxu0 }
 0x46a   : > { %v1790_v57 = vsub.f32 0.0, %v1682_v44  ;;  %v1685_v48 = vadd.f32 %v2411_v47, %v2997_v25  ;;  %v1676_v49 = vpop.f32.mrb[55].mxu0 }
 0x46b   : > { %v1788_v50 = vsub.f32 0.0, %v1674_v46  ;;  %v1677_v63 = vadd.f32 %v2997_v25, %v1676_v49 }
 0x46c   : > { %v1828_v37 = vmul.f32 1.442695, %v1790_v57  ;;  %v1791_v51 = vsub.f32 0.0, %v1685_v48 }
 0x46d   : > { %v1824_v52 = vmul.f32 1.442695, %v1788_v50  ;;  %v1789_v53 = vsub.f32 0.0, %v1677_v63 }
 0x46e   : > { %2487 = vpow2.f32 %v1828_v37  ;;  %v1830_v54 = vmul.f32 1.442695, %v1791_v51 }
 0x46f   : > { %2489 = vpow2.f32 %v1824_v52  ;;  %v1826_v55 = vmul.f32 1.442695, %v1789_v53  ;;  %v2414_v56 = vpop.f32.mrb[56].mxu0 }
 0x470   : > { %v2480_v58 = vpop.eup %2479  ;;  %2491 = vpow2.f32 %v1830_v54  ;;  %v1698_v59 = vadd.f32 %v2414_v56, %v2997_v25  ;;  %v1689_v60 = vpop.f32.mrb[57].mxu0 }
 0x471   : > { %v2482_v61 = vpop.eup %2481  ;;  %v1882_v62 = vadd.f32 1.0, %v2480_v58  ;;  %2493 = vpow2.f32 %v1826_v55  ;;  %v1690_v0 = vadd.f32 %v2997_v25, %v1689_v60  ;;  %v2415_v1 = vpop.f32.mrb[58].mxu0 }
 0x472   : > { %v2484_v2 = vpop.eup %2483  ;;  %v1880_v3 = vadd.f32 1.0, %v2482_v61  ;;  %v1794_v4 = vsub.f32 0.0, %v1698_v59  ;;  %v1701_v5 = vadd.f32 %v2415_v1, %v2997_v25  ;;  %v1692_v6 = vpop.f32.mrb[59].mxu0 }
 0x473   : > { %v2486_v7 = vpop.eup %2485  ;;  %2495 = vrcp.f32 %v1882_v62  ;;  %v1883_v8 = vadd.f32 1.0, %v2484_v2  ;;  %v1792_v9 = vsub.f32 0.0, %v1690_v0  ;;  %v1693_v10 = vadd.f32 %v2997_v25, %v1692_v6 }
 0x474   : > { %2497 = vrcp.f32 %v1880_v3  ;;  %v1881_v11 = vadd.f32 1.0, %v2486_v7  ;;  %v1836_v12 = vmul.f32 1.442695, %v1794_v4  ;;  %v1795_v13 = vsub.f32 0.0, %v1701_v5 }
 0x475   : > { %2499 = vrcp.f32 %v1883_v8  ;;  %v1832_v14 = vmul.f32 1.442695, %v1792_v9  ;;  %v1793_v15 = vsub.f32 0.0, %v1693_v10 }
 0x476   : > { %2501 = vrcp.f32 %v1881_v11  ;;  %v1838_v16 = vmul.f32 1.442695, %v1795_v13 }
 0x477   : > { %2503 = vpow2.f32 %v1836_v12  ;;  %v1834_v17 = vmul.f32 1.442695, %v1793_v15  ;;  %v2418_v18 = vpop.f32.mrb[60].mxu0 }
 0x478   : > { %v2488_v19 = vpop.eup %2487  ;;  %2505 = vpow2.f32 %v1832_v14  ;;  %v1714_v20 = vadd.f32 %v2418_v18, %v2997_v25  ;;  %v1705_v21 = vpop.f32.mrb[61].mxu0 }
 0x479   : > { %v2490_v22 = vpop.eup %2489  ;;  %v1886_v23 = vadd.f32 1.0, %v2488_v19  ;;  %2507 = vpow2.f32 %v1838_v16  ;;  %v1706_v24 = vadd.f32 %v2997_v25, %v1705_v21  ;;  %v2419_v26 = vpop.f32.mrb[62].mxu0 }
 0x47a   : > { %v2492_v27 = vpop.eup %2491  ;;  %v1884_v28 = vadd.f32 1.0, %v2490_v22  ;;  %2509 = vpow2.f32 %v1834_v17  ;;  %v1798_v29 = vsub.f32 0.0, %v1714_v20  ;;  %v1717_v41 = vadd.f32 %v2419_v26, %v2997_v25  ;;  %v1708_v30 = vpop.f32.mrb[63].mxu0 }
 0x47b   : > { %v2494_v31 = vpop.eup %2493  ;;  %2511 = vrcp.f32 %v1886_v23  ;;  %v1887_v32 = vadd.f32 1.0, %v2492_v27  ;;  %v1796_v33 = vsub.f32 0.0, %v1706_v24  ;;  %v1709_v35 = vadd.f32 %v2997_v25, %v1708_v30 }
 0x47c   : > { %2513 = vrcp.f32 %v1884_v28  ;;  %v1885_v36 = vadd.f32 1.0, %v2494_v31  ;;  %v1844_v38 = vmul.f32 1.442695, %v1798_v29  ;;  %v1799_v39 = vsub.f32 0.0, %v1717_v41 }
 0x47d   : > { %v2496_v40 = vpop.eup %2495  ;;  %2515 = vrcp.f32 %v1887_v32  ;;  %v1840_v34 = vmul.f32 1.442695, %v1796_v33  ;;  %v1797_v42 = vsub.f32 0.0, %v1709_v35 }
 0x47e   : > { %v2498_v43 = vpop.eup %2497  ;;  %1946 = vst [vmem:[%s3019_s20 + $0x10] sm:$0xff] %v2496_v40  ;;  %2517 = vrcp.f32 %v1885_v36  ;;  %v1846_v44 = vmul.f32 1.442695, %v1799_v39 }
 0x47f   : > { %v2500_v45 = vpop.eup %2499  ;;  %1944 = vst [vmem:[%s3019_s20] sm:$0xff] %v2498_v43  ;;  %2519 = vpow2.f32 %v1844_v38  ;;  %v1842_v46 = vmul.f32 1.442695, %v1797_v42  ;;  %v2422_v47 = vpop.f32.mrb[64].mxu0 }
 0x480   : > { %v2502_v57 = vpop.eup %2501  ;;  %1947 = vst [vmem:[%s3019_s20 + $0x18] sm:$0xff] %v2500_v45  ;;  %2521 = vpow2.f32 %v1840_v34  ;;  %v1730_v48 = vadd.f32 %v2422_v47, %v2997_v25  ;;  %v1721_v49 = vpop.f32.mrb[65].mxu0 }
 0x481   : > { %v2504_v50 = vpop.eup %2503  ;;  %1945 = vst [vmem:[%s3019_s20 + $0x8] sm:$0xff] %v2502_v57  ;;  %2523 = vpow2.f32 %v1846_v44  ;;  %v1722_v63 = vadd.f32 %v2997_v25, %v1721_v49  ;;  %v2423_v37 = vpop.f32.mrb[66].mxu0 }
 0x482   : > { %v2506_v51 = vpop.eup %2505  ;;  %v1890_v52 = vadd.f32 1.0, %v2504_v50  ;;  %2525 = vpow2.f32 %v1842_v46  ;;  %v1802_v53 = vsub.f32 0.0, %v1730_v48  ;;  %v1733_v54 = vadd.f32 %v2423_v37, %v2997_v25  ;;  %v1724_v55 = vpop.f32.mrb[67].mxu0 }
 0x483   : > { %v2508_v56 = vpop.eup %2507  ;;  %v1888_v58 = vadd.f32 1.0, %v2506_v51  ;;  %v1800_v59 = vsub.f32 0.0, %v1722_v63  ;;  %v1725_v60 = vadd.f32 %v2997_v25, %v1724_v55 }
 0x484   : > { %v2510_v61 = vpop.eup %2509  ;;  %2527 = vrcp.f32 %v1890_v52  ;;  %v1891_v62 = vadd.f32 1.0, %v2508_v56  ;;  %v1852_v0 = vmul.f32 1.442695, %v1802_v53  ;;  %v1803_v1 = vsub.f32 0.0, %v1733_v54 }
 0x485   : > { %v2512_v2 = vpop.eup %2511  ;;  %2529 = vrcp.f32 %v1888_v58  ;;  %v1889_v3 = vadd.f32 1.0, %v2510_v61  ;;  %v1848_v4 = vmul.f32 1.442695, %v1800_v59  ;;  %v1801_v5 = vsub.f32 0.0, %v1725_v60 }
 0x486   : > { %v2514_v6 = vpop.eup %2513  ;;  %1950 = vst [vmem:[%s3019_s20 + $0x30] sm:$0xff] %v2512_v2  ;;  %2531 = vrcp.f32 %v1891_v62  ;;  %v1854_v7 = vmul.f32 1.442695, %v1803_v1 }
 0x487   : > { %v2516_v8 = vpop.eup %2515  ;;  %1948 = vst [vmem:[%s3019_s20 + $0x20] sm:$0xff] %v2514_v6  ;;  %2533 = vrcp.f32 %v1889_v3  ;;  %v1850_v9 = vmul.f32 1.442695, %v1801_v5  ;;  %v2426_v10 = vpop.f32.mrb[68].mxu0 }
 0x488   : > { %v2518_v11 = vpop.eup %2517  ;;  %1951 = vst [vmem:[%s3019_s20 + $0x38] sm:$0xff] %v2516_v8  ;;  %2535 = vpow2.f32 %v1852_v0  ;;  %v1746_v12 = vadd.f32 %v2426_v10, %v2997_v25  ;;  %v1737_v13 = vpop.f32.mrb[69].mxu0 }
 0x489   : > { %v2520_v14 = vpop.eup %2519  ;;  %1949 = vst [vmem:[%s3019_s20 + $0x28] sm:$0xff] %v2518_v11  ;;  %2537 = vpow2.f32 %v1848_v4  ;;  %v1738_v15 = vadd.f32 %v2997_v25, %v1737_v13  ;;  %v2427_v16 = vpop.f32.mrb[70].mxu0 }
 0x48a   : > { %v2522_v17 = vpop.eup %2521  ;;  %v1894_v18 = vadd.f32 1.0, %v2520_v14  ;;  %2539 = vpow2.f32 %v1854_v7  ;;  %v1806_v19 = vsub.f32 0.0, %v1746_v12  ;;  %v1749_v20 = vadd.f32 %v2427_v16, %v2997_v25  ;;  %v1740_v21 = vpop.f32.mrb[71].mxu0 }
 0x48b   : > { %v2524_v22 = vpop.eup %2523  ;;  %v1892_v23 = vadd.f32 1.0, %v2522_v17  ;;  %2541 = vpow2.f32 %v1850_v9  ;;  %v1804_v24 = vsub.f32 0.0, %v1738_v15  ;;  %v1741_v26 = vadd.f32 %v2997_v25, %v1740_v21 }
 0x48c   : > { %v2526_v27 = vpop.eup %2525  ;;  %2543 = vrcp.f32 %v1894_v18  ;;  %v1895_v28 = vadd.f32 1.0, %v2524_v22  ;;  %v1860_v29 = vmul.f32 1.442695, %v1806_v19  ;;  %v1807_v41 = vsub.f32 0.0, %v1749_v20 }
 0x48d   : > { %2545 = vrcp.f32 %v1892_v23  ;;  %v1893_v30 = vadd.f32 1.0, %v2526_v27  ;;  %v1856_v31 = vmul.f32 1.442695, %v1804_v24  ;;  %v1805_v32 = vsub.f32 0.0, %v1741_v26 }
 0x48e   : > { %v2528_v33 = vpop.eup %2527  ;;  %2547 = vrcp.f32 %v1895_v28  ;;  %v1862_v35 = vmul.f32 1.442695, %v1807_v41 }
 0x48f   : > { %v2530_v36 = vpop.eup %2529  ;;  %1954 = vst [vmem:[%s3019_s20 + $0x50] sm:$0xff] %v2528_v33  ;;  %2549 = vrcp.f32 %v1893_v30  ;;  %v1858_v38 = vmul.f32 1.442695, %v1805_v32  ;;  %v2430_v39 = vpop.f32.mrb[72].mxu0 }
 0x490   : > { %v2532_v40 = vpop.eup %2531  ;;  %1952 = vst [vmem:[%s3019_s20 + $0x40] sm:$0xff] %v2530_v36  ;;  %2551 = vpow2.f32 %v1860_v29  ;;  %v1762_v34 = vadd.f32 %v2430_v39, %v2997_v25  ;;  %v1753_v42 = vpop.f32.mrb[73].mxu0 }
 0x491   : > { %v2534_v43 = vpop.eup %2533  ;;  %1955 = vst [vmem:[%s3019_s20 + $0x58] sm:$0xff] %v2532_v40  ;;  %2553 = vpow2.f32 %v1856_v31  ;;  %v1754_v44 = vadd.f32 %v2997_v25, %v1753_v42  ;;  %v2431_v45 = vpop.f32.mrb[74].mxu0 }
 0x492   : > { %v2536_v46 = vpop.eup %2535  ;;  %1953 = vst [vmem:[%s3019_s20 + $0x48] sm:$0xff] %v2534_v43  ;;  %2555 = vpow2.f32 %v1862_v35  ;;  %v1810_v47 = vsub.f32 0.0, %v1762_v34  ;;  %v1765_v57 = vadd.f32 %v2431_v45, %v2997_v25  ;;  %v1756_v48 = vpop.f32.mrb[75].mxu0 }
 0x493   : > { %v2538_v49 = vpop.eup %2537  ;;  %v1898_v50 = vadd.f32 1.0, %v2536_v46  ;;  %2557 = vpow2.f32 %v1858_v38  ;;  %v1808_v63 = vsub.f32 0.0, %v1754_v44  ;;  %v1757_v37 = vadd.f32 %v2997_v25, %v1756_v48 }
 0x494   : > { %v2540_v51 = vpop.eup %2539  ;;  %v1896_v52 = vadd.f32 1.0, %v2538_v49  ;;  %v1811_v53 = vsub.f32 0.0, %v1765_v57  ;;  %v1868_v56 = vmul.f32 1.442695, %v1810_v47 }
 0x495   : > { %v2542_v54 = vpop.eup %2541  ;;  %2559 = vrcp.f32 %v1898_v50  ;;  %v1899_v55 = vadd.f32 1.0, %v2540_v51  ;;  %v1809_v58 = vsub.f32 0.0, %v1757_v37  ;;  %v1864_v61 = vmul.f32 1.442695, %v1808_v63 }
 0x496   : > { %v2544_v59 = vpop.eup %2543  ;;  %2561 = vrcp.f32 %v1896_v52  ;;  %v1897_v60 = vadd.f32 1.0, %v2542_v54  ;;  %v1870_v0 = vmul.f32 1.442695, %v1811_v53 }
 0x497   : > { %v2546_v62 = vpop.eup %2545  ;;  %1958 = vst [vmem:[%s3019_s20 + $0x70] sm:$0xff] %v2544_v59  ;;  %2563 = vrcp.f32 %v1899_v55  ;;  %v2434_v1 = vpop.f32.mrb[76].mxu0  ;;  %v1866_v3 = vmul.f32 1.442695, %v1809_v58 }
 0x498   : > { %v2548_v2 = vpop.eup %2547  ;;  %1956 = vst [vmem:[%s3019_s20 + $0x60] sm:$0xff] %v2546_v62  ;;  %2565 = vrcp.f32 %v1897_v60  ;;  %v1778_v4 = vadd.f32 %v2434_v1, %v2997_v25  ;;  %v1769_v5 = vpop.f32.mrb[77].mxu0 }
 0x499   : > { %v2550_v6 = vpop.eup %2549  ;;  %1959 = vst [vmem:[%s3019_s20 + $0x78] sm:$0xff] %v2548_v2  ;;  %2567 = vpow2.f32 %v1868_v56  ;;  %v1770_v7 = vadd.f32 %v2997_v25, %v1769_v5  ;;  %v2435_v8 = vpop.f32.mrb[78].mxu0 }
 0x49a   : > { %v2552_v9 = vpop.eup %2551  ;;  %1957 = vst [vmem:[%s3019_s20 + $0x68] sm:$0xff] %v2550_v6  ;;  %2569 = vpow2.f32 %v1864_v61  ;;  %v1814_v10 = vsub.f32 0.0, %v1778_v4  ;;  %v1781_v11 = vadd.f32 %v2435_v8, %v2997_v25  ;;  %v1772_v12 = vpop.f32.mrb[79].mxu0 }
 0x49b   : > { %v2554_v13 = vpop.eup %2553  ;;  %v1902_v14 = vadd.f32 1.0, %v2552_v9  ;;  %2571 = vpow2.f32 %v1870_v0  ;;  %v1812_v15 = vsub.f32 0.0, %v1770_v7  ;;  %v1773_v16 = vadd.f32 %v2997_v25, %v1772_v12 }
 0x49c   : > { %v2556_v17 = vpop.eup %2555  ;;  %v1900_v18 = vadd.f32 1.0, %v2554_v13  ;;  %2573 = vpow2.f32 %v1866_v3  ;;  %v1815_v19 = vsub.f32 0.0, %v1781_v11  ;;  %v1876_v22 = vmul.f32 1.442695, %v1814_v10 }
 0x49d   : > { %v2558_v20 = vpop.eup %2557  ;;  %2575 = vrcp.f32 %v1902_v14  ;;  %v1903_v21 = vadd.f32 1.0, %v2556_v17  ;;  %v1813_v23 = vsub.f32 0.0, %v1773_v16  ;;  %v1872_v26 = vmul.f32 1.442695, %v1812_v15 }
 0x49e   : > { %2577 = vrcp.f32 %v1900_v18  ;;  %v1901_v24 = vadd.f32 1.0, %v2558_v20  ;;  %v1878_v28 = vmul.f32 1.442695, %v1815_v19 }
 0x49f   : > { %v2560_v27 = vpop.eup %2559  ;;  %2579 = vrcp.f32 %v1903_v21  ;;  %v1874_v29 = vmul.f32 1.442695, %v1813_v23 }
 0x4a0   : > { %v2562_v25 = vpop.eup %2561  ;;  %1962 = vst [vmem:[%s3019_s20 + $0x90] sm:$0xff] %v2560_v27  ;;  %2581 = vrcp.f32 %v1901_v24 }
 0x4a1   : > { %v2564_v41 = vpop.eup %2563  ;;  %1960 = vst [vmem:[%s3019_s20 + $0x80] sm:$0xff] %v2562_v25  ;;  %2583 = vpow2.f32 %v1876_v22 }
 0x4a2   : > { %v2566_v30 = vpop.eup %2565  ;;  %1963 = vst [vmem:[%s3019_s20 + $0x98] sm:$0xff] %v2564_v41  ;;  %2585 = vpow2.f32 %v1872_v26 }
 0x4a3   : > { %v2568_v31 = vpop.eup %2567  ;;  %1961 = vst [vmem:[%s3019_s20 + $0x88] sm:$0xff] %v2566_v30  ;;  %2587 = vpow2.f32 %v1878_v28 }
 0x4a4   : > { %v2570_v32 = vpop.eup %2569  ;;  %v1906_v33 = vadd.f32 1.0, %v2568_v31  ;;  %2589 = vpow2.f32 %v1874_v29 }
 0x4a5   : > { %v2572_v35 = vpop.eup %2571  ;;  %v1904_v36 = vadd.f32 1.0, %v2570_v32 }
 0x4a6   : > { %v2574_v38 = vpop.eup %2573  ;;  %2591 = vrcp.f32 %v1906_v33  ;;  %v1907_v39 = vadd.f32 1.0, %v2572_v35 }
 0x4a7   : > { %v2576_v40 = vpop.eup %2575  ;;  %2593 = vrcp.f32 %v1904_v36  ;;  %v1905_v34 = vadd.f32 1.0, %v2574_v38 }
 0x4a8   : > { %v2578_v42 = vpop.eup %2577  ;;  %1966 = vst [vmem:[%s3019_s20 + $0xb0] sm:$0xff] %v2576_v40  ;;  %2595 = vrcp.f32 %v1907_v39 }
 0x4a9   : > { %v2580_v43 = vpop.eup %2579  ;;  %1964 = vst [vmem:[%s3019_s20 + $0xa0] sm:$0xff] %v2578_v42  ;;  %2597 = vrcp.f32 %v1905_v34 }
 0x4aa   : > { %v2582_v44 = vpop.eup %2581  ;;  %1967 = vst [vmem:[%s3019_s20 + $0xb8] sm:$0xff] %v2580_v43 }
 0x4ab   : > { %v2584_v45 = vpop.eup %2583  ;;  %1965 = vst [vmem:[%s3019_s20 + $0xa8] sm:$0xff] %v2582_v44 }
 0x4ac   : > { %v2586_v46 = vpop.eup %2585  ;;  %v1910_v47 = vadd.f32 1.0, %v2584_v45 }
 0x4ad   : > { %v2588_v57 = vpop.eup %2587  ;;  %v1908_v48 = vadd.f32 1.0, %v2586_v46 }
 0x4ae   : > { %v2590_v49 = vpop.eup %2589  ;;  %2599 = vrcp.f32 %v1910_v47  ;;  %v1911_v50 = vadd.f32 1.0, %v2588_v57 }
 0x4af   : > { %2601 = vrcp.f32 %v1908_v48  ;;  %v1909_v63 = vadd.f32 1.0, %v2590_v49 }
 0x4b0   : > { %v2592_v37 = vpop.eup %2591  ;;  %2603 = vrcp.f32 %v1911_v50 }
 0x4b1   : > { %v2594_v51 = vpop.eup %2593  ;;  %1970 = vst [vmem:[%s3019_s20 + $0xd0] sm:$0xff] %v2592_v37  ;;  %2605 = vrcp.f32 %v1909_v63 }
 0x4b2   : > { %v2596_v52 = vpop.eup %2595  ;;  %1968 = vst [vmem:[%s3019_s20 + $0xc0] sm:$0xff] %v2594_v51 }
 0x4b3   : > { %v2598_v53 = vpop.eup %2597  ;;  %1971 = vst [vmem:[%s3019_s20 + $0xd8] sm:$0xff] %v2596_v52 }
 0x4b4   : > { %1969 = vst [vmem:[%s3019_s20 + $0xc8] sm:$0xff] %v2598_v53 }
 0x4b8   : > { %v2600_v54 = vpop.eup %2599 }
 0x4b9   : > { %v2602_v55 = vpop.eup %2601  ;;  %1974 = vst [vmem:[%s3019_s20 + $0xf0] sm:$0xff] %v2600_v54 }
 0x4ba   : > { %v2604_v56 = vpop.eup %2603  ;;  %1972 = vst [vmem:[%s3019_s20 + $0xe0] sm:$0xff] %v2602_v55 }
 0x4bb   : > { %v2606_v58 = vpop.eup %2605  ;;  %1975 = vst [vmem:[%s3019_s20 + $0xf8] sm:$0xff] %v2604_v56 }
 0x4bc   : > { %1973 = vst [vmem:[%s3019_s20 + $0xe8] sm:$0xff] %v2606_v58 }
 0x4bd PF: > { %s21_s17 = sadd.s32 1, %s2613_s17  }
 0x4be   : > { %p18_p4 = scmp.ge.s32.totalorder %s21_s17, 4  }
 0x4c0   :  { %20 = sbr.rel (!%p18_p4) target bundleno = 1 (0x1), region = 94 }

</bundles_post_ra>
